<compile_context>
chip_gen: v7x
topology: tpu7x:2x2x1
jax: 0.10.0
libtpu: 0.0.40
codegen_flags: <defaults>
</compile_context>

<pallas_src>
import functools

import jax
import jax.numpy as jnp
from jax.experimental import pallas as pl
from jax.experimental.pallas import tpu as pltpu


# ----------------------------------------------------------------------------
# Kernel: 3x3 conv (stride 1, pad 1, no bias) over a row tile as ONE im2col
# matmul on the MXU.
#   x_ref   : (1, H, W, Cin)       unpadded NHWC image (resident per batch)
#   w_ref   : (9*Cin, Cout)        weight, tap-major ((dh*3+dw)*Cin + ci, co)
#   o_ref   : (1, TH*W, Cout)      flattened output rows for this tile
#   xpad_ref: (H+2, W+2, Cin) f32  zero-padded image scratch (filled at t==0)
#   col_ref : (TH*W, 9*Cin)        im2col slab scratch (bf16)
# ----------------------------------------------------------------------------
def _conv3x3_kernel(x_ref, w_ref, o_ref, xpad_ref, col_ref, *, TH, H, W, Cin):
    t = pl.program_id(1)
    cdt = col_ref.dtype

    # Zero-pad the (resident) image into VMEM scratch once per batch element.
    # The row-tile axis is "arbitrary", so t runs 0..T-1 in order per batch.
    @pl.when(t == 0)
    def _fill_padded():
        xpad_ref[...] = jnp.zeros_like(xpad_ref)
        xpad_ref[pl.ds(1, H), pl.ds(1, W), :] = x_ref[0].astype(xpad_ref.dtype)

    row0 = pl.multiple_of(t * TH, TH)

    # im2col: col[h*W + w, (dh*3+dw)*Cin + ci] = xpad[row0 + h + dh, w + dw, ci]
    # Direct ref slices per tap -> scratch (no shifted copies of loaded values).
    for dh in range(3):
        for dw in range(3):
            k = dh * 3 + dw
            tap = xpad_ref[pl.ds(row0 + dh, TH), pl.ds(dw, W), :]   # (TH, W, Cin)
            col_ref[:, k * Cin:(k + 1) * Cin] = (
                tap.reshape(TH * W, Cin).astype(cdt))

    # One large-K MXU matmul: (TH*W, 9*Cin) @ (9*Cin, Cout), f32 accumulation.
    o_ref[0] = jnp.dot(col_ref[...], w_ref[...],
                       preferred_element_type=jnp.float32).astype(o_ref.dtype)


# ----------------------------------------------------------------------------
# Wrapper: NCHW in, NCHW out (matches PyTorch).  Conv runs in NHWC/bf16 inside
# the kernel; PixelShuffle(2) + NHWC->NCHW are one transpose of the lane-dense
# kernel output.
# ----------------------------------------------------------------------------
def upsample_forward(x_nchw, w_oihw, *, compute_dtype=jnp.bfloat16, tile_h=None):
    B, Cin, H, W = x_nchw.shape
    Cout, cin_w, kh, kw = w_oihw.shape
    assert (cin_w, kh, kw) == (Cin, 3, 3)
    assert Cout % 4 == 0
    C = Cout // 4
    if W % 8 != 0:
        # TODO(synk): pad W (and mask the tail) to support widths that are not
        # multiples of 8 (needed by the (8,128) layout rules on the im2col /
        # output blocks).
        raise NotImplementedError("W must be a multiple of 8")

    # One fused relayout before the kernel: NCHW -> NHWC + bf16 cast.  Kernel
    # operands and the output store are then lane-dense (Cout = 128 lanes).
    x_nhwc = jnp.transpose(x_nchw, (0, 2, 3, 1)).astype(compute_dtype)
    # Tap-major weight: (Cout, Cin, 3, 3) -> ((dh*3+dw)*Cin + ci, Cout).
    w_flat = (jnp.transpose(w_oihw, (2, 3, 1, 0))
              .reshape(9 * Cin, Cout).astype(compute_dtype))

    # Row-tile size: target a ~2 MiB f32 output block per grid step (amortizes
    # per-step overhead, fits v7x VMEM with double buffering); divisor of H.
    if tile_h is None:
        tile_h = max(8, (2 * 1024 * 1024) // max(1, W * Cout * 4))
    TH = max(1, min(tile_h, H))
    while H % TH:
        TH -= 1
    T = H // TH

    kern = functools.partial(_conv3x3_kernel, TH=TH, H=H, W=W, Cin=Cin)
    y = pl.pallas_call(
        kern,
        out_shape=jax.ShapeDtypeStruct((B, H * W, Cout), x_nchw.dtype),
        grid=(B, T),
        in_specs=[
            # Whole image per batch element, resident across the row-tile axis.
            # TODO(synk): for large images switch to halo row-tiles (TH+2 rows
            # per step) so the per-step footprint is O(TH), not O(H) (v7x has
            # only 64 MiB VMEM and Cin=32 is lane-padded 4x).
            pl.BlockSpec((1, H, W, Cin), lambda b, t: (b, 0, 0, 0)),
            pl.BlockSpec((9 * Cin, Cout), lambda b, t: (0, 0)),
        ],
        out_specs=pl.BlockSpec((1, TH * W, Cout), lambda b, t: (b, t, 0)),
        scratch_shapes=[
            pltpu.VMEM((H + 2, W + 2, Cin), jnp.float32),   # zero-padded image
            pltpu.VMEM((TH * W, 9 * Cin), compute_dtype),   # im2col slab
        ],
        compiler_params=pltpu.CompilerParams(
            # Batch axis parallel (megacore / v7x dual TC); row-tile axis is
            # "arbitrary" because the padded-image scratch is filled at t == 0
            # and reused for t > 0.
            dimension_semantics=("parallel", "arbitrary")),
    )(x_nhwc, w_flat)

    # Fused PixelShuffle(2) + NHWC->NCHW in one transpose:
    #   y[b, h*W + w, 4*c + 2*i + j]  ->  out[b, c, 2*h + i, 2*w + j]
    y = y.reshape(B, H, W, C, 2, 2)
    return jnp.transpose(y, (0, 3, 1, 4, 2, 5)).reshape(B, C, 2 * H, 2 * W)


# ----------------------------------------------------------------------------
# Pure-JAX reference (lax.conv + PixelShuffle) for correctness checking.
# ----------------------------------------------------------------------------
def upsample_reference(x_nchw, w_oihw):
    conv = jax.lax.conv_general_dilated(
        x_nchw, w_oihw, window_strides=(1, 1), padding=((1, 1), (1, 1)),
        dimension_numbers=("NCHW", "OIHW", "NCHW"),
        precision=jax.lax.Precision.HIGHEST)
    B, C4, H, W = conv.shape
    C = C4 // 4
    conv = conv.reshape(B, C, 2, 2, H, W)
    return jnp.transpose(conv, (0, 1, 4, 2, 5, 3)).reshape(B, C, 2 * H, 2 * W)


if __name__ == "__main__":
    n_feat = 32
    B, H, W = 2, 16, 16

    key = jax.random.PRNGKey(0)
    kx, kwk = jax.random.split(key)
    x = jax.random.normal(kx, (B, n_feat, H, W), jnp.float32)          # NCHW
    # PyTorch conv weight layout: (Cout, Cin, kh, kw), Cout = 4*n_feat.
    w = (0.05 * jax.random.normal(kwk, (4 * n_feat, n_feat, 3, 3))
         ).astype(jnp.float32)

    fwd = jax.jit(upsample_forward)
    out = jax.block_until_ready(fwd(x, w))
    assert out.shape == (B, n_feat, 2 * H, 2 * W), out.shape

    # The kernel feeds bf16 operands to the MXU (f32 accumulation), so compare
    # against a reference computed from the SAME bf16-rounded operands; the
    # tolerance is then tight enough to catch tap-indexing / layout bugs.
    x_r = x.astype(jnp.bfloat16).astype(jnp.float32)
    w_r = w.astype(jnp.bfloat16).astype(jnp.float32)
    ref = upsample_reference(x_r, w_r)
    max_err = float(jnp.max(jnp.abs(out - ref)))
    assert max_err < 2e-3, f"max abs err {max_err}"

    print("KERNEL_OK")
</pallas_src>

<mosaic_0001>
module attributes {stable_mosaic.version = 11 : i64} {
  func.func @_conv3x3_kernel(%arg0: i32, %arg1: i32, %arg2: memref<1x16x16x32xbf16, #tpu.memory_space<vmem>>, %arg3: memref<288x128xbf16, #tpu.memory_space<vmem>>, %arg4: memref<1x256x128xf32, #tpu.memory_space<vmem>>, %arg5: memref<18x18x32xf32, #tpu.memory_space<vmem>>, %arg6: memref<256x288xbf16, #tpu.memory_space<vmem>>) attributes {dimension_semantics = [#tpu.dimension_semantics<parallel>, #tpu.dimension_semantics<arbitrary>], iteration_bounds = array<i64: 2, 1>, scalar_prefetch = 0 : i64, scratch_operands = 2 : i64, tpu.core_type = #tpu.core_type<tc>, window_params = [{transform_indices = @transform_0, window_bounds = array<i64: 1, 16, 16, 32>}, {pipeline_mode = #tpu.pipeline_mode<synchronous>, transform_indices = @transform_1, window_bounds = array<i64: 288, 128>}, {transform_indices = @transform_2, window_bounds = array<i64: 1, 256, 128>}]} {
    %c0_i32 = arith.constant 0 : i32
    %0 = arith.cmpi eq, %arg1, %c0_i32 : i32
    %1 = arith.extui %0 : i1 to i32
    %c0_i32_0 = arith.constant 0 : i32
    %2 = arith.cmpi ne, %1, %c0_i32_0 : i32
    scf.if %2 {
      %cst_40 = arith.constant 0.000000e+00 : f32
      %65 = vector.broadcast %cst_40 : f32 to vector<18x18x32xf32>
      %c0_41 = arith.constant 0 : index
      %c0_42 = arith.constant 0 : index
      %c0_43 = arith.constant 0 : index
      %66 = vector.load %arg5[%c0_41, %c0_42, %c0_43] : memref<18x18x32xf32, #tpu.memory_space<vmem>>, vector<18x18x32xf32>
      tpu.vector_store %arg5[%c0_41, %c0_42, %c0_43], %65 {strides = array<i32>} : memref<18x18x32xf32, #tpu.memory_space<vmem>>, vector<18x18x32xf32>,
      %c0_44 = arith.constant 0 : index
      %c0_45 = arith.constant 0 : index
      %c0_46 = arith.constant 0 : index
      %c0_47 = arith.constant 0 : index
      %67 = vector.load %arg2[%c0_44, %c0_45, %c0_46, %c0_47] : memref<1x16x16x32xbf16, #tpu.memory_space<vmem>>, vector<1x16x16x32xbf16>
      %68 = vector.shape_cast %67 : vector<1x16x16x32xbf16> to vector<16x16x32xbf16>
      %69 = arith.extf %68 : vector<16x16x32xbf16> to vector<16x16x32xf32>
      %c1_48 = arith.constant 1 : index
      %c1_49 = arith.constant 1 : index
      %c0_50 = arith.constant 0 : index
      %70 = vector.load %arg5[%c1_48, %c1_49, %c0_50] : memref<18x18x32xf32, #tpu.memory_space<vmem>>, vector<16x16x32xf32>
      tpu.vector_store %arg5[%c1_48, %c1_49, %c0_50], %69 {strides = array<i32>} : memref<18x18x32xf32, #tpu.memory_space<vmem>>, vector<16x16x32xf32>,
    } else {
    }
    %c16_i32 = arith.constant 16 : i32
    %3 = arith.muli %arg1, %c16_i32 : i32
    %4 = tpu.assume_multiple %3, 16 : i32
    %c0_i32_1 = arith.constant 0 : i32
    %5 = arith.addi %4, %c0_i32_1 : i32
    %6 = arith.index_cast %5 : i32 to index
    %c0 = arith.constant 0 : index
    %c0_2 = arith.constant 0 : index
    %7 = vector.load %arg5[%6, %c0, %c0_2] : memref<18x18x32xf32, #tpu.memory_space<vmem>>, vector<16x16x32xf32>
    %8 = vector.shape_cast %7 : vector<16x16x32xf32> to vector<256x32xf32>
    %9 = arith.truncf %8 : vector<256x32xf32> to vector<256x32xbf16>
    %c0_3 = arith.constant 0 : index
    %c0_4 = arith.constant 0 : index
    %10 = vector.load %arg6[%c0_3, %c0_4] : memref<256x288xbf16, #tpu.memory_space<vmem>>, vector<256x32xbf16>
    tpu.vector_store %arg6[%c0_3, %c0_4], %9 {strides = array<i32>} : memref<256x288xbf16, #tpu.memory_space<vmem>>, vector<256x32xbf16>,
    %c0_i32_5 = arith.constant 0 : i32
    %11 = arith.addi %4, %c0_i32_5 : i32
    %12 = arith.index_cast %11 : i32 to index
    %c1 = arith.constant 1 : index
    %c0_6 = arith.constant 0 : index
    %13 = vector.load %arg5[%12, %c1, %c0_6] : memref<18x18x32xf32, #tpu.memory_space<vmem>>, vector<16x16x32xf32>
    %14 = vector.shape_cast %13 : vector<16x16x32xf32> to vector<256x32xf32>
    %15 = arith.truncf %14 : vector<256x32xf32> to vector<256x32xbf16>
    %c0_7 = arith.constant 0 : index
    %c32 = arith.constant 32 : index
    %16 = vector.load %arg6[%c0_7, %c32] : memref<256x288xbf16, #tpu.memory_space<vmem>>, vector<256x32xbf16>
    tpu.vector_store %arg6[%c0_7, %c32], %15 {strides = array<i32>} : memref<256x288xbf16, #tpu.memory_space<vmem>>, vector<256x32xbf16>,
    %c0_i32_8 = arith.constant 0 : i32
    %17 = arith.addi %4, %c0_i32_8 : i32
    %18 = arith.index_cast %17 : i32 to index
    %c2 = arith.constant 2 : index
    %c0_9 = arith.constant 0 : index
    %19 = vector.load %arg5[%18, %c2, %c0_9] : memref<18x18x32xf32, #tpu.memory_space<vmem>>, vector<16x16x32xf32>
    %20 = vector.shape_cast %19 : vector<16x16x32xf32> to vector<256x32xf32>
    %21 = arith.truncf %20 : vector<256x32xf32> to vector<256x32xbf16>
    %c0_10 = arith.constant 0 : index
    %c64 = arith.constant 64 : index
    %22 = vector.load %arg6[%c0_10, %c64] : memref<256x288xbf16, #tpu.memory_space<vmem>>, vector<256x32xbf16>
    tpu.vector_store %arg6[%c0_10, %c64], %21 {strides = array<i32>} : memref<256x288xbf16, #tpu.memory_space<vmem>>, vector<256x32xbf16>,
    %c1_i32 = arith.constant 1 : i32
    %23 = arith.addi %4, %c1_i32 : i32
    %24 = arith.index_cast %23 : i32 to index
    %c0_11 = arith.constant 0 : index
    %c0_12 = arith.constant 0 : index
    %25 = vector.load %arg5[%24, %c0_11, %c0_12] : memref<18x18x32xf32, #tpu.memory_space<vmem>>, vector<16x16x32xf32>
    %26 = vector.shape_cast %25 : vector<16x16x32xf32> to vector<256x32xf32>
    %27 = arith.truncf %26 : vector<256x32xf32> to vector<256x32xbf16>
    %c0_13 = arith.constant 0 : index
    %c96 = arith.constant 96 : index
    %28 = vector.load %arg6[%c0_13, %c96] : memref<256x288xbf16, #tpu.memory_space<vmem>>, vector<256x32xbf16>
    tpu.vector_store %arg6[%c0_13, %c96], %27 {strides = array<i32>} : memref<256x288xbf16, #tpu.memory_space<vmem>>, vector<256x32xbf16>,
    %c1_i32_14 = arith.constant 1 : i32
    %29 = arith.addi %4, %c1_i32_14 : i32
    %30 = arith.index_cast %29 : i32 to index
    %c1_15 = arith.constant 1 : index
    %c0_16 = arith.constant 0 : index
    %31 = vector.load %arg5[%30, %c1_15, %c0_16] : memref<18x18x32xf32, #tpu.memory_space<vmem>>, vector<16x16x32xf32>
    %32 = vector.shape_cast %31 : vector<16x16x32xf32> to vector<256x32xf32>
    %33 = arith.truncf %32 : vector<256x32xf32> to vector<256x32xbf16>
    %c0_17 = arith.constant 0 : index
    %c128 = arith.constant 128 : index
    %34 = vector.load %arg6[%c0_17, %c128] : memref<256x288xbf16, #tpu.memory_space<vmem>>, vector<256x32xbf16>
    tpu.vector_store %arg6[%c0_17, %c128], %33 {strides = array<i32>} : memref<256x288xbf16, #tpu.memory_space<vmem>>, vector<256x32xbf16>,
    %c1_i32_18 = arith.constant 1 : i32
    %35 = arith.addi %4, %c1_i32_18 : i32
    %36 = arith.index_cast %35 : i32 to index
    %c2_19 = arith.constant 2 : index
    %c0_20 = arith.constant 0 : index
    %37 = vector.load %arg5[%36, %c2_19, %c0_20] : memref<18x18x32xf32, #tpu.memory_space<vmem>>, vector<16x16x32xf32>
    %38 = vector.shape_cast %37 : vector<16x16x32xf32> to vector<256x32xf32>
    %39 = arith.truncf %38 : vector<256x32xf32> to vector<256x32xbf16>
    %c0_21 = arith.constant 0 : index
    %c160 = arith.constant 160 : index
    %40 = vector.load %arg6[%c0_21, %c160] : memref<256x288xbf16, #tpu.memory_space<vmem>>, vector<256x32xbf16>
    tpu.vector_store %arg6[%c0_21, %c160], %39 {strides = array<i32>} : memref<256x288xbf16, #tpu.memory_space<vmem>>, vector<256x32xbf16>,
    %c2_i32 = arith.constant 2 : i32
    %41 = arith.addi %4, %c2_i32 : i32
    %42 = arith.index_cast %41 : i32 to index
    %c0_22 = arith.constant 0 : index
    %c0_23 = arith.constant 0 : index
    %43 = vector.load %arg5[%42, %c0_22, %c0_23] : memref<18x18x32xf32, #tpu.memory_space<vmem>>, vector<16x16x32xf32>
    %44 = vector.shape_cast %43 : vector<16x16x32xf32> to vector<256x32xf32>
    %45 = arith.truncf %44 : vector<256x32xf32> to vector<256x32xbf16>
    %c0_24 = arith.constant 0 : index
    %c192 = arith.constant 192 : index
    %46 = vector.load %arg6[%c0_24, %c192] : memref<256x288xbf16, #tpu.memory_space<vmem>>, vector<256x32xbf16>
    tpu.vector_store %arg6[%c0_24, %c192], %45 {strides = array<i32>} : memref<256x288xbf16, #tpu.memory_space<vmem>>, vector<256x32xbf16>,
    %c2_i32_25 = arith.constant 2 : i32
    %47 = arith.addi %4, %c2_i32_25 : i32
    %48 = arith.index_cast %47 : i32 to index
    %c1_26 = arith.constant 1 : index
    %c0_27 = arith.constant 0 : index
    %49 = vector.load %arg5[%48, %c1_26, %c0_27] : memref<18x18x32xf32, #tpu.memory_space<vmem>>, vector<16x16x32xf32>
    %50 = vector.shape_cast %49 : vector<16x16x32xf32> to vector<256x32xf32>
    %51 = arith.truncf %50 : vector<256x32xf32> to vector<256x32xbf16>
    %c0_28 = arith.constant 0 : index
    %c224 = arith.constant 224 : index
    %52 = vector.load %arg6[%c0_28, %c224] : memref<256x288xbf16, #tpu.memory_space<vmem>>, vector<256x32xbf16>
    tpu.vector_store %arg6[%c0_28, %c224], %51 {strides = array<i32>} : memref<256x288xbf16, #tpu.memory_space<vmem>>, vector<256x32xbf16>,
    %c2_i32_29 = arith.constant 2 : i32
    %53 = arith.addi %4, %c2_i32_29 : i32
    %54 = arith.index_cast %53 : i32 to index
    %c2_30 = arith.constant 2 : index
    %c0_31 = arith.constant 0 : index
    %55 = vector.load %arg5[%54, %c2_30, %c0_31] : memref<18x18x32xf32, #tpu.memory_space<vmem>>, vector<16x16x32xf32>
    %56 = vector.shape_cast %55 : vector<16x16x32xf32> to vector<256x32xf32>
    %57 = arith.truncf %56 : vector<256x32xf32> to vector<256x32xbf16>
    %c0_32 = arith.constant 0 : index
    %c256 = arith.constant 256 : index
    %58 = vector.load %arg6[%c0_32, %c256] : memref<256x288xbf16, #tpu.memory_space<vmem>>, vector<256x32xbf16>
    tpu.vector_store %arg6[%c0_32, %c256], %57 {strides = array<i32>} : memref<256x288xbf16, #tpu.memory_space<vmem>>, vector<256x32xbf16>,
    %c0_33 = arith.constant 0 : index
    %c0_34 = arith.constant 0 : index
    %59 = vector.load %arg6[%c0_33, %c0_34] : memref<256x288xbf16, #tpu.memory_space<vmem>>, vector<256x288xbf16>
    %c0_35 = arith.constant 0 : index
    %c0_36 = arith.constant 0 : index
    %60 = vector.load %arg3[%c0_35, %c0_36] : memref<288x128xbf16, #tpu.memory_space<vmem>>, vector<288x128xbf16>
    %cst = arith.constant dense<0.000000e+00> : vector<256x128xf32>
    %61 = tpu.matmul %59, %60, %cst {dimension_numbers = #tpu.dot_dimension_numbers<[1], [0], [0], [1], [0, 0, 1, 1], [], []>} : vector<256x288xbf16>, vector<288x128xbf16>, vector<256x128xf32> -> vector<256x128xf32>
    %c0_37 = arith.constant 0 : index
    %c0_38 = arith.constant 0 : index
    %c0_39 = arith.constant 0 : index
    %62 = vector.load %arg4[%c0_37, %c0_38, %c0_39] : memref<1x256x128xf32, #tpu.memory_space<vmem>>, vector<1x256x128xf32>
    %63 = vector.shape_cast %62 : vector<1x256x128xf32> to vector<256x128xf32>
    %64 = vector.shape_cast %61 : vector<256x128xf32> to vector<1x256x128xf32>
    tpu.vector_store %arg4[%c0_37, %c0_38, %c0_39], %64 {strides = array<i32>} : memref<1x256x128xf32, #tpu.memory_space<vmem>>, vector<1x256x128xf32>,
    return
  }
  func.func @transform_0(%arg0: i32, %arg1: i32) -> (i32, i32, i32, i32) {
    %c0_i32 = arith.constant 0 : i32
    %c0_i32_0 = arith.constant 0 : i32
    %c0_i32_1 = arith.constant 0 : i32
    %c0_i32_2 = arith.constant 0 : i32
    return %arg0, %c0_i32, %c0_i32_0, %c0_i32_1 : i32, i32, i32, i32
  }
  func.func @transform_1(%arg0: i32, %arg1: i32) -> (i32, i32) {
    %c0_i32 = arith.constant 0 : i32
    %c0_i32_0 = arith.constant 0 : i32
    %c0_i32_1 = arith.constant 0 : i32
    return %c0_i32, %c0_i32_0 : i32, i32
  }
  func.func @transform_2(%arg0: i32, %arg1: i32) -> (i32, i32, i32) {
    %c0_i32 = arith.constant 0 : i32
    %c0_i32_0 = arith.constant 0 : i32
    return %arg0, %arg1, %c0_i32 : i32, i32, i32
  }
}

</mosaic_0001>

<bundles_post_ra>
// kernel: upsample_forward.1
= control target key start
LH: loop header
LB: loop body
LE: loop exit
PB: predicated region body
PF: predicated region fallthrough
CT: control target
= control target key end

     0   :  { %s2572_s9 = smov 0   ;;  %s2574_s10 = smov 0   ;;  %s3271_s0 = inlined_call_operand.vmem [shape: bf16[2,16,16,32], index: 0, kind: input, shape index: {}]   ;;  %s3272_s1 = inlined_call_operand.vmem [shape: bf16[288,128], index: 1, kind: input, shape index: {}]   ;;  %s3273_s2 = inlined_call_operand.vmem [shape: f32[2,256,128], index: 2, kind: output, shape index: {}]  }
   0x1   :  { %s2576_s11 = smov 0  }
   0x2 LB: > { %s24_s12 = sadd.s32 1, %s2547_s10  ;;  %p1987_p0 = scmp.ge.s32.totalorder %s2551_s11, 1  ;;  %s2551_s11 = sphi %s2576_s11, %s12_s11   ;;  %s2547_s10 = sphi %s2574_s10, %s3275_s10   ;;  %s2543_s9 = sphi %s2572_s9, %s3274_s9  }
   0x3   : > { %p26_p1 = scmp.ge.s32.totalorder %s24_s12, 2  ;;  %p126_p2 = scmp.lt.s32.totalorder %s2551_s11, 3 }
   0x5   : > { %s3277_s12 = smov (%p26_p1, %s24_s12), 0  ;;  %p127_p3 = pnand %p1987_p0, %p126_p2 }
   0x6   : > { %vm172_vm0 = vcmask (!%p127_p3), 261120   ;;  %vm175_vm1 = vcmask (!%p127_p3), 254976   ;;  %v2511_v0 = vld [vmem:[%s3272_s1 + $0x40] sm:$0xff] (!%p127_p3)   ;;  %v2553_v1 = vmov (!%p127_p3), 0.0   ;;  %p152_p4 = scmp.lt.s32.totalorder (!%p127_p3), %s2543_s9, 1  ;;  %v2513_v3 = vld [vmem:[%s3272_s1 + $0x48] sm:$0xff] (!%p127_p3)  }
   0x7   : > { %130 = sbr.rel (%p127_p3) target bundleno = 573 (0x23d), region = 28  ;;  %173 = vst.msk [vmem:[#allocation2] sm:$0xff] (!%p127_p3), %vm172_vm0, %v2553_v1  ;;  %174 = vst.msk [vmem:[#allocation2 + $0x8] sm:$0xff] (!%p127_p3), %vm172_vm0, %v2553_v1  ;;  %2301 = vmatprep.subr.bf16.mxu0 (!%p127_p3), %v2511_v0  ;;  %v2512_v2 = vld [vmem:[%s3272_s1] sm:$0xff] (!%p127_p3)   ;;  %2467 = vmatprep.subr.bf16.mxu1 (!%p127_p3), %v2511_v0  ;;  %v2514_v4 = vld [vmem:[%s3272_s1 + $0x8] sm:$0xff] (!%p127_p3)   ;;  %s2554_s27 = smov (!%p127_p3), 64  }
   0x8   : > { %176 = vst.msk [vmem:[#allocation2 + $0x10] sm:$0x3] (!%p127_p3), %vm175_vm1, %v2553_v1  ;;  %179 = vst.msk [vmem:[#allocation2 + $0x28] sm:$0x3] (!%p127_p3), %vm175_vm1, %v2553_v1  ;;  %2302 = vmatpush3.bf16.msra.mxu0 (!%p127_p3), %v2512_v2  ;;  %2475 = vmatpush3.bf16.msra.mxu1 (!%p127_p3), %v2512_v2  ;;  %v2515_v5 = vld [vmem:[%s3272_s1 + $0x50] sm:$0xff] (!%p127_p3)   ;;  %s2555_s28 = smov (!%p127_p3), 32  }
   0x9   : > { %177 = vst.msk [vmem:[#allocation2 + $0x18] sm:$0xff] (!%p127_p3), %vm172_vm0, %v2553_v1  ;;  %178 = vst.msk [vmem:[#allocation2 + $0x20] sm:$0xff] (!%p127_p3), %vm172_vm0, %v2553_v1  ;;  %2303 = vmatprep.subr.bf16.mxu0 (!%p127_p3), %v2513_v3  ;;  %2468 = vmatprep.subr.bf16.mxu1 (!%p127_p3), %v2513_v3  ;;  %v2516_v43 = vld [vmem:[%s3272_s1 + $0x10] sm:$0xff] (!%p127_p3)   ;;  %v2517_v52 = vld [vmem:[%s3272_s1 + $0x58] sm:$0xff] (!%p127_p3)   ;;  %s2556_s7 = smov (!%p127_p3), 96   ;;  %vm505_vm2 = vcmask (!%p127_p3), 523520  }
   0xa   : > { %180 = vst.msk [vmem:[#allocation2 + $0x30] sm:$0xff] (!%p127_p3), %vm172_vm0, %v2553_v1  ;;  %181 = vst.msk [vmem:[#allocation2 + $0x38] sm:$0xff] (!%p127_p3), %vm172_vm0, %v2553_v1  ;;  %v2518_v53 = vld [vmem:[%s3272_s1 + $0x18] sm:$0xff] (!%p127_p3)   ;;  %vm634_vm3 = vcmask (!%p127_p3), 785920   ;;  %vm766_vm4 = vcmask (!%p127_p3), 1048320  }
   0xb   : > { %182 = vst.msk [vmem:[#allocation2 + $0x40] sm:$0x3] (!%p127_p3), %vm175_vm1, %v2553_v1  ;;  %185 = vst.msk [vmem:[#allocation2 + $0x58] sm:$0x3] (!%p127_p3), %vm175_vm1, %v2553_v1 }
   0xc   : > { %183 = vst.msk [vmem:[#allocation2 + $0x48] sm:$0xff] (!%p127_p3), %vm172_vm0, %v2553_v1  ;;  %184 = vst.msk [vmem:[#allocation2 + $0x50] sm:$0xff] (!%p127_p3), %vm172_vm0, %v2553_v1  ;;  %2304 = vmatpush3.bf16.msra.mxu0 (!%p127_p3), %v2514_v4  ;;  %2476 = vmatpush3.bf16.msra.mxu1 (!%p127_p3), %v2514_v4 }
   0xd   : > { %186 = vst.msk [vmem:[#allocation2 + $0x60] sm:$0xff] (!%p127_p3), %vm172_vm0, %v2553_v1  ;;  %187 = vst.msk [vmem:[#allocation2 + $0x68] sm:$0xff] (!%p127_p3), %vm172_vm0, %v2553_v1  ;;  %2305 = vmatprep.subr.bf16.mxu0 (!%p127_p3), %v2515_v5  ;;  %2469 = vmatprep.subr.bf16.mxu1 (!%p127_p3), %v2515_v5 }
   0xe   : > { %188 = vst.msk [vmem:[#allocation2 + $0x70] sm:$0x3] %vm175_vm1, %v2553_v1  ;;  %191 = vst.msk [vmem:[#allocation2 + $0x88] sm:$0x3] %vm175_vm1, %v2553_v1  ;;  %s3279_s9 = smov (!%p152_p4, %s2543_s9), 1  ;;  %v522_v9 = vld [vmem:[#allocation2 + $0x2] sm:$0xff] }
   0xf   : > { %189 = vst.msk [vmem:[#allocation2 + $0x78] sm:$0xff] %vm172_vm0, %v2553_v1  ;;  %190 = vst.msk [vmem:[#allocation2 + $0x80] sm:$0xff] %vm172_vm0, %v2553_v1  ;;  %s2220_s21 = sshll.u32 %s3279_s9, 7  ;;  %v523_v10 = vld [vmem:[#allocation2 + $0xa] sm:$0xff]  ;;  %v393_v11 = vld [vmem:[#allocation2 + $0x1] sm:$0xff] }
  0x10   : > { %192 = vst.msk [vmem:[#allocation2 + $0x90] sm:$0xff] %vm172_vm0, %v2553_v1  ;;  %193 = vst.msk [vmem:[#allocation2 + $0x98] sm:$0xff] %vm172_vm0, %v2553_v1  ;;  %s2666_s24 = scalar_lea.vmem %s3271_s0, %s2220_s21  ;;  %v554_v16 = vpack.c.bf16 %v523_v10, %v522_v9  ;;  %v394_v17 = vld [vmem:[#allocation2 + $0x9] sm:$0xff]  ;;  %v328_v49 = vld [vmem:[#allocation2] sm:$0xff]  ;;  %2306 = vmatpush3.bf16.msra.mxu0 %v2516_v43  ;;  %2477 = vmatpush3.bf16.msra.mxu1 %v2516_v43 }
  0x11   : > { %194 = vst.msk [vmem:[#allocation2 + $0xa0] sm:$0x3] %vm175_vm1, %v2553_v1  ;;  %197 = vst.msk [vmem:[#allocation2 + $0xb8] sm:$0x3] %vm175_vm1, %v2553_v1  ;;  %v2286_v6 = vld [vmem:[%s2666_s24 + $0x8] sm:$0xff]   ;;  %v2223_v7 = vld [vmem:[%s2666_s24] sm:$0xff]   ;;  %v425_v22 = vpack.c.bf16 %v394_v17, %v393_v11  ;;  %2307 = vmatprep.subr.bf16.mxu0 %v2517_v52  ;;  %2470 = vmatprep.subr.bf16.mxu1 %v2517_v52 }
  0x12   : > { %195 = vst.msk [vmem:[#allocation2 + $0xa8] sm:$0xff] %vm172_vm0, %v2553_v1  ;;  %196 = vst.msk [vmem:[#allocation2 + $0xb0] sm:$0xff] %vm172_vm0, %v2553_v1  ;;  %v2297_v8 = vld [vmem:[%s2666_s24 + $0x60] sm:$0xff]   ;;  %v2228_v12 = vunpack.c.l.bf16 %v2286_v6  ;;  %v2229_v13 = vunpack.c.h.bf16 %v2286_v6  ;;  %v2224_v14 = vunpack.c.l.bf16 %v2223_v7  ;;  %v2225_v15 = vunpack.c.h.bf16 %v2223_v7  ;;  %v2296_v20 = vld [vmem:[%s2666_s24 + $0x58] sm:$0xff]   ;;  %586 = vrot.lane.b32.xlu1 %v554_v16, %s2554_s27 }
  0x13   : > { %198 = vst.msk [vmem:[#allocation2 + $0xc0] sm:$0xff] %vm172_vm0, %v2553_v1  ;;  %199 = vst.msk [vmem:[#allocation2 + $0xc8] sm:$0xff] %vm172_vm0, %v2553_v1  ;;  %v2272_v18 = vunpack.c.l.bf16 %v2297_v8  ;;  %v2273_v19 = vunpack.c.h.bf16 %v2297_v8  ;;  %v2298_v21 = vld [vmem:[%s2666_s24 + $0x68] sm:$0xff]   ;;  %v2268_v23 = vunpack.c.l.bf16 %v2296_v20  ;;  %v2269_v24 = vunpack.c.h.bf16 %v2296_v20  ;;  %v2287_v26 = vld [vmem:[%s2666_s24 + $0x10] sm:$0xff]   ;;  %457 = vrot.lane.b32.xlu0 %v425_v22, %s2555_s28 }
  0x14   : > { %200 = vst.msk [vmem:[#allocation2 + $0xd0] sm:$0x3] %vm175_vm1, %v2553_v1  ;;  %203 = vst.msk [vmem:[#allocation2 + $0xe8] sm:$0x3] %vm175_vm1, %v2553_v1  ;;  %v2276_v25 = vunpack.c.l.bf16 %v2298_v21  ;;  %v2299_v27 = vld [vmem:[%s2666_s24 + $0x70] sm:$0xff]   ;;  %v2288_v28 = vld [vmem:[%s2666_s24 + $0x18] sm:$0xff]   ;;  %v2277_v29 = vunpack.c.h.bf16 %v2298_v21  ;;  %v2232_v30 = vunpack.c.l.bf16 %v2287_v26  ;;  %v2233_v31 = vunpack.c.h.bf16 %v2287_v26  ;;  %2308 = vmatpush3.bf16.msra.mxu0 %v2518_v53  ;;  %2478 = vmatpush3.bf16.msra.mxu1 %v2518_v53 }
  0x15   : > { %201 = vst.msk [vmem:[#allocation2 + $0xd8] sm:$0xff] %vm172_vm0, %v2553_v1  ;;  %202 = vst.msk [vmem:[#allocation2 + $0xe0] sm:$0xff] %vm172_vm0, %v2553_v1  ;;  %v2280_v32 = vunpack.c.l.bf16 %v2299_v27  ;;  %v2300_v33 = vld [vmem:[%s2666_s24 + $0x78] sm:$0xff]   ;;  %v2289_v34 = vld [vmem:[%s2666_s24 + $0x20] sm:$0xff]   ;;  %v2281_v35 = vunpack.c.h.bf16 %v2299_v27  ;;  %v2236_v36 = vunpack.c.l.bf16 %v2288_v28  ;;  %v2237_v37 = vunpack.c.h.bf16 %v2288_v28 }
  0x16   : > { %204 = vst.msk [vmem:[#allocation2 + $0xf0] sm:$0xff] %vm172_vm0, %v2553_v1  ;;  %205 = vst.msk [vmem:[#allocation2 + $0xf8] sm:$0xff] %vm172_vm0, %v2553_v1  ;;  %v2284_v38 = vunpack.c.l.bf16 %v2300_v33  ;;  %v2285_v39 = vunpack.c.h.bf16 %v2300_v33  ;;  %v2240_v40 = vunpack.c.l.bf16 %v2289_v34  ;;  %v2241_v41 = vunpack.c.h.bf16 %v2289_v34  ;;  %v2290_v42 = vld [vmem:[%s2666_s24 + $0x28] sm:$0xff]   ;;  %v2291_v44 = vld [vmem:[%s2666_s24 + $0x30] sm:$0xff]  }
  0x17   : > { %206 = vst.msk [vmem:[#allocation2 + $0x100] sm:$0x3] %vm175_vm1, %v2553_v1  ;;  %209 = vst.msk [vmem:[#allocation2 + $0x118] sm:$0x3] %vm175_vm1, %v2553_v1  ;;  %v2244_v45 = vunpack.c.l.bf16 %v2290_v42  ;;  %v2245_v46 = vunpack.c.h.bf16 %v2290_v42  ;;  %v2248_v47 = vunpack.c.l.bf16 %v2291_v44  ;;  %v329_v48 = vld [vmem:[#allocation2 + $0x8] sm:$0xff]  ;;  %v2249_v50 = vunpack.c.h.bf16 %v2291_v44  ;;  %v2292_v53 = vld [vmem:[%s2666_s24 + $0x38] sm:$0xff]  }
  0x18   : > { %207 = vst.msk [vmem:[#allocation2 + $0x108] sm:$0xff] %vm172_vm0, %v2553_v1  ;;  %208 = vst.msk [vmem:[#allocation2 + $0x110] sm:$0xff] %vm172_vm0, %v2553_v1  ;;  %v360_v51 = vpack.c.bf16 %v329_v48, %v328_v49  ;;  %v2522_v52 = vld [vmem:[%s3272_s1 + $0x28] sm:$0xff]  }
  0x19   : > { %210 = vst.msk [vmem:[#allocation2 + $0x120] sm:$0xff] %vm172_vm0, %v2553_v1  ;;  %211 = vst.msk [vmem:[#allocation2 + $0x128] sm:$0xff] %vm172_vm0, %v2553_v1 }
  0x1a   : > { %212 = vst.msk [vmem:[#allocation2 + $0x130] sm:$0x3] %vm175_vm1, %v2553_v1  ;;  %215 = vst.msk [vmem:[#allocation2 + $0x148] sm:$0x3] %vm175_vm1, %v2553_v1 }
  0x1b   : > { %213 = vst.msk [vmem:[#allocation2 + $0x138] sm:$0xff] %vm172_vm0, %v2553_v1  ;;  %214 = vst.msk [vmem:[#allocation2 + $0x140] sm:$0xff] %vm172_vm0, %v2553_v1 }
  0x1c   : > { %216 = vst.msk [vmem:[#allocation2 + $0x150] sm:$0xff] %vm172_vm0, %v2553_v1  ;;  %217 = vst.msk [vmem:[#allocation2 + $0x158] sm:$0xff] %vm172_vm0, %v2553_v1 }
  0x1d   : > { %218 = vst.msk [vmem:[#allocation2 + $0x160] sm:$0x3] %vm175_vm1, %v2553_v1  ;;  %221 = vst.msk [vmem:[#allocation2 + $0x178] sm:$0x3] %vm175_vm1, %v2553_v1 }
  0x1e   : > { %219 = vst.msk [vmem:[#allocation2 + $0x168] sm:$0xff] %vm172_vm0, %v2553_v1  ;;  %220 = vst.msk [vmem:[#allocation2 + $0x170] sm:$0xff] %vm172_vm0, %v2553_v1 }
  0x1f   : > { %222 = vst.msk [vmem:[#allocation2 + $0x180] sm:$0xff] %vm172_vm0, %v2553_v1  ;;  %223 = vst.msk [vmem:[#allocation2 + $0x188] sm:$0xff] %vm172_vm0, %v2553_v1 }
  0x20   : > { %224 = vst.msk [vmem:[#allocation2 + $0x190] sm:$0x3] %vm175_vm1, %v2553_v1  ;;  %227 = vst.msk [vmem:[#allocation2 + $0x1a8] sm:$0x3] %vm175_vm1, %v2553_v1 }
  0x21   : > { %225 = vst.msk [vmem:[#allocation2 + $0x198] sm:$0xff] %vm172_vm0, %v2553_v1  ;;  %226 = vst.msk [vmem:[#allocation2 + $0x1a0] sm:$0xff] %vm172_vm0, %v2553_v1 }
  0x22   : > { %295 = vst.msk [vmem:[#allocation2 + $0x31] sm:$0xff] %vm172_vm0, %v2228_v12  ;;  %296 = vst.msk [vmem:[#allocation2 + $0x39] sm:$0xff] %vm172_vm0, %v2229_v13 }
  0x23   : > { %293 = vst.msk [vmem:[#allocation2 + $0x19] sm:$0xff] %vm172_vm0, %v2224_v14  ;;  %294 = vst.msk [vmem:[#allocation2 + $0x21] sm:$0xff] %vm172_vm0, %v2225_v15 }
  0x24   : > { %317 = vst.msk [vmem:[#allocation2 + $0x139] sm:$0xff] %vm172_vm0, %v2272_v18  ;;  %318 = vst.msk [vmem:[#allocation2 + $0x141] sm:$0xff] %vm172_vm0, %v2273_v19 }
  0x25   : > { %315 = vst.msk [vmem:[#allocation2 + $0x121] sm:$0xff] %vm172_vm0, %v2268_v23  ;;  %316 = vst.msk [vmem:[#allocation2 + $0x129] sm:$0xff] %vm172_vm0, %v2269_v24 }
  0x26   : > { %319 = vst.msk [vmem:[#allocation2 + $0x151] sm:$0xff] %vm172_vm0, %v2276_v25  ;;  %320 = vst.msk [vmem:[#allocation2 + $0x159] sm:$0xff] %vm172_vm0, %v2277_v29 }
  0x27   : > { %297 = vst.msk [vmem:[#allocation2 + $0x49] sm:$0xff] %vm172_vm0, %v2232_v30  ;;  %298 = vst.msk [vmem:[#allocation2 + $0x51] sm:$0xff] %vm172_vm0, %v2233_v31 }
  0x28   : > { %321 = vst.msk [vmem:[#allocation2 + $0x169] sm:$0xff] %vm172_vm0, %v2280_v32  ;;  %322 = vst.msk [vmem:[#allocation2 + $0x171] sm:$0xff] %vm172_vm0, %v2281_v35 }
  0x29   : > { %299 = vst.msk [vmem:[#allocation2 + $0x61] sm:$0xff] %vm172_vm0, %v2236_v36  ;;  %300 = vst.msk [vmem:[#allocation2 + $0x69] sm:$0xff] %vm172_vm0, %v2237_v37  ;;  %v2088_v54 = vld [vmem:[#allocation2 + $0x30] sm:$0xff]  ;;  %v2089_v55 = vld [vmem:[#allocation2 + $0x38] sm:$0xff] }
  0x2a   : > { %323 = vst.msk [vmem:[#allocation2 + $0x181] sm:$0xff] %vm172_vm0, %v2284_v38  ;;  %324 = vst.msk [vmem:[#allocation2 + $0x189] sm:$0xff] %vm172_vm0, %v2285_v39  ;;  %v2056_v56 = vld [vmem:[#allocation2 + $0x1a] sm:$0xff]  ;;  %v2719_v57 = vpack.c.bf16 %v2089_v55, %v2088_v54  ;;  %v2057_v58 = vld [vmem:[#allocation2 + $0x22] sm:$0xff] }
  0x2b   : > { %301 = vst.msk [vmem:[#allocation2 + $0x79] sm:$0xff] %vm172_vm0, %v2240_v40  ;;  %302 = vst.msk [vmem:[#allocation2 + $0x81] sm:$0xff] %vm172_vm0, %v2241_v41  ;;  %v2120_v59 = vld [vmem:[#allocation2 + $0x31] sm:$0xff]  ;;  %v2121_v60 = vld [vmem:[#allocation2 + $0x39] sm:$0xff]  ;;  %v2721_v61 = vpack.c.bf16 %v2057_v58, %v2056_v56  ;;  %v2252_v58 = vunpack.c.l.bf16 %v2292_v53 }
  0x2c   : > { %303 = vst.msk [vmem:[#allocation2 + $0x91] sm:$0xff] %vm172_vm0, %v2244_v45  ;;  %304 = vst.msk [vmem:[#allocation2 + $0x99] sm:$0xff] %vm172_vm0, %v2245_v46  ;;  %v2723_v62 = vpack.c.bf16 %v2121_v60, %v2120_v59  ;;  %v2080_v63 = vld [vmem:[#allocation2 + $0x13a] sm:$0xff]  ;;  %v2081_v0 = vld [vmem:[#allocation2 + $0x142] sm:$0xff]  ;;  %1042 = vrot.lane.b32.xlu1 %v2719_v57, %s2554_s27  ;;  %v2253_v59 = vunpack.c.h.bf16 %v2292_v53 }
  0x2d   : > { %305 = vst.msk [vmem:[#allocation2 + $0xa9] sm:$0xff] %vm172_vm0, %v2248_v47  ;;  %306 = vst.msk [vmem:[#allocation2 + $0xb1] sm:$0xff] %vm172_vm0, %v2249_v50  ;;  %v1992_v1 = vld [vmem:[#allocation2 + $0x18] sm:$0xff]  ;;  %v1993_v2 = vld [vmem:[#allocation2 + $0x20] sm:$0xff]  ;;  %911 = vrot.lane.b32.xlu0 %v2721_v61, %s2555_s28  ;;  %v2729_v3 = vpack.c.bf16 %v2081_v0, %v2080_v63 }
  0x2e   : > { %377 = vst.msk [vmem:[#allocation3] sm:$0xff] %vm172_vm0, %v360_v51  ;;  %v417_v4 = vld [vmem:[#allocation2 + $0x121] sm:$0xff]  ;;  %v686_v5 = vpack.c.bf16 %v1993_v2, %v1992_v1  ;;  %832 = vst.msk [vmem:[#allocation3 + $0x20] sm:$0xff] %vm172_vm0, %v2723_v62  ;;  %v418_v6 = vld [vmem:[#allocation2 + $0x129] sm:$0xff] }
  0x2f   : > { %v2144_v7 = vld [vmem:[#allocation2 + $0x151] sm:$0xff]  ;;  %v2145_v8 = vld [vmem:[#allocation2 + $0x159] sm:$0xff]  ;;  %v396_v14 = vld [vmem:[#allocation2 + $0x21] sm:$0xff]  ;;  %v437_v15 = vpack.c.bf16 %v418_v6, %v417_v4  ;;  %307 = vst.msk [vmem:[#allocation2 + $0xc1] sm:$0xff] %vm172_vm0, %v2252_v58 }
  0x30   : > { %v2733_v9 = vpack.c.bf16 %v2145_v8, %v2144_v7  ;;  %v2016_v10 = vld [vmem:[#allocation2 + $0x138] sm:$0xff]  ;;  %v2017_v11 = vld [vmem:[#allocation2 + $0x140] sm:$0xff]  ;;  %378 = vst.msk [vmem:[#allocation3 + $0x18] sm:$0xff] %vm172_vm0, %v686_v5  ;;  %1170 = vrot.lane.b32.xlu1 %v2723_v62, %s2556_s7  ;;  %v2112_v16 = vld [vmem:[#allocation2 + $0x150] sm:$0xff] }
  0x31   : > { %v698_v12 = vpack.c.bf16 %v2017_v11, %v2016_v10  ;;  %v395_v13 = vld [vmem:[#allocation2 + $0x19] sm:$0xff]  ;;  %935 = vrot.lane.b32.xlu0 %v2729_v3, %s2555_s28  ;;  %v546_v17 = vld [vmem:[#allocation2 + $0x122] sm:$0xff]  ;;  %v547_v18 = vld [vmem:[#allocation2 + $0x12a] sm:$0xff]  ;;  %308 = vst.msk [vmem:[#allocation2 + $0xc9] sm:$0xff] %vm172_vm0, %v2253_v59 }
  0x32   : > { %v426_v19 = vpack.c.bf16 %v396_v14, %v395_v13  ;;  %844 = vst.msk [vmem:[#allocation3 + $0x140] sm:$0xff] %vm172_vm0, %v2733_v9  ;;  %v2113_v20 = vld [vmem:[#allocation2 + $0x158] sm:$0xff]  ;;  %v2122_v21 = vld [vmem:[#allocation2 + $0x49] sm:$0xff]  ;;  %v420_v25 = vld [vmem:[#allocation2 + $0x141] sm:$0xff]  ;;  %v566_v26 = vpack.c.bf16 %v547_v18, %v546_v17 }
  0x33   : > { %v2123_v22 = vld [vmem:[#allocation2 + $0x51] sm:$0xff]  ;;  %390 = vst.msk [vmem:[#allocation3 + $0x138] sm:$0xff] %vm172_vm0, %v698_v12  ;;  %v419_v24 = vld [vmem:[#allocation2 + $0x139] sm:$0xff]  ;;  %v2146_v28 = vld [vmem:[#allocation2 + $0x169] sm:$0xff]  ;;  %v2750_v30 = vpack.c.bf16 %v2113_v20, %v2112_v16 }
  0x34   : > { %v2743_v23 = vpack.c.bf16 %v2123_v22, %v2122_v21  ;;  %831 = vst.msk [vmem:[#allocation3 + $0x8] sm:$0xff] %vm172_vm0, %v426_v19  ;;  %718 = vrot.lane.b32.xlu1 %v686_v5, %s2556_s7  ;;  %v2747_v27 = vpack.c.bf16 %v420_v25, %v419_v24  ;;  %v2147_v29 = vld [vmem:[#allocation2 + $0x171] sm:$0xff]  ;;  %v2059_v33 = vld [vmem:[#allocation2 + $0x3a] sm:$0xff]  ;;  %v2090_v37 = vld [vmem:[#allocation2 + $0x48] sm:$0xff] }
  0x35   : > { %481 = vrot.lane.b32.xlu0 %v437_v15, %s2555_s28  ;;  %v2752_v31 = vpack.c.bf16 %v2147_v29, %v2146_v28  ;;  %v2058_v32 = vld [vmem:[#allocation2 + $0x32] sm:$0xff]  ;;  %v2130_v40 = vld [vmem:[#allocation2 + $0xa9] sm:$0xff]  ;;  %v2083_v43 = vld [vmem:[#allocation2 + $0x15a] sm:$0xff] }
  0x36   : > { %833 = vst.msk [vmem:[#allocation3 + $0x38] sm:$0xff] %vm172_vm0, %v2743_v23  ;;  %843 = vst.msk [vmem:[#allocation3 + $0x128] sm:$0xff] %vm172_vm0, %v2747_v27  ;;  %v2766_v34 = vpack.c.bf16 %v2059_v33, %v2058_v32  ;;  %v2128_v35 = vld [vmem:[#allocation2 + $0x91] sm:$0xff]  ;;  %v2129_v36 = vld [vmem:[#allocation2 + $0x99] sm:$0xff] }
  0x37   : > { %845 = vst.msk [vmem:[#allocation3 + $0x158] sm:$0xff] %vm172_vm0, %v2752_v31  ;;  %v2091_v38 = vld [vmem:[#allocation2 + $0x50] sm:$0xff]  ;;  %v2768_v39 = vpack.c.bf16 %v2129_v36, %v2128_v35  ;;  %v2519_v45 = vld [vmem:[%s3272_s1 + $0x60] sm:$0xff]   ;;  %v2521_v51 = vld [vmem:[%s3272_s1 + $0x68] sm:$0xff]  }
  0x38   : > { %610 = vrot.lane.b32.xlu1 %v566_v26, %s2554_s27  ;;  %v2131_v41 = vld [vmem:[#allocation2 + $0xb1] sm:$0xff]  ;;  %v2780_v46 = vpack.c.bf16 %v2091_v38, %v2090_v37  ;;  %v2520_v47 = vld [vmem:[%s3272_s1 + $0x20] sm:$0xff]   ;;  %2309 = vmatprep.subr.bf16.mxu0 %v2519_v45  ;;  %v353_v55 = vld [vmem:[#allocation2 + $0x128] sm:$0xff] }
  0x39   : > { %1066 = vrot.lane.b32.xlu0 %v2750_v30, %s2554_s27  ;;  %v2082_v42 = vld [vmem:[#allocation2 + $0x152] sm:$0xff]  ;;  %v2771_v44 = vpack.c.bf16 %v2131_v41, %v2130_v40  ;;  %836 = vst.msk [vmem:[#allocation3 + $0x80] sm:$0xff] %vm172_vm0, %v2768_v39  ;;  %v2068_v48 = vld [vmem:[#allocation2 + $0xaa] sm:$0xff]  ;;  %2471 = vmatprep.subr.bf16.mxu1 %v2519_v45  ;;  %v352_v54 = vld [vmem:[#allocation2 + $0x120] sm:$0xff] }
  0x3a   : > { %v2069_v49 = vld [vmem:[#allocation2 + $0xb2] sm:$0xff]  ;;  %2310 = vmatpush3.bf16.msra.mxu0 %v2520_v47  ;;  %2479 = vmatpush3.bf16.msra.mxu1 %v2520_v47  ;;  %v2802_v56 = vpack.c.bf16 %v2083_v43, %v2082_v42  ;;  %v2804_v60 = vpack.c.bf16 %v353_v55, %v352_v54  ;;  %v2114_v0 = vld [vmem:[#allocation2 + $0x168] sm:$0xff]  ;;  %v2293_v5 = vld [vmem:[%s2666_s24 + $0x40] sm:$0xff]  }
  0x3b   : > { %v2785_v50 = vpack.c.bf16 %v2069_v49, %v2068_v48  ;;  %837 = vst.msk [vmem:[#allocation3 + $0x98] sm:$0xff] %vm172_vm0, %v2771_v44  ;;  %2311 = vmatprep.subr.bf16.mxu0 %v2521_v51  ;;  %2472 = vmatprep.subr.bf16.mxu1 %v2521_v51  ;;  %v2524_v63 = vld [vmem:[%s3272_s1 + $0x30] sm:$0xff]   ;;  %v2525_v2 = vld [vmem:[%s3272_s1 + $0x78] sm:$0xff]   ;;  %v2294_v6 = vld [vmem:[%s2666_s24 + $0x48] sm:$0xff]   ;;  %v2256_v8 = vunpack.c.l.bf16 %v2293_v5  ;;  %v2257_v10 = vunpack.c.h.bf16 %v2293_v5 }
  0x3c   : > { %742 = vrot.lane.b32.xlu1 %v698_v12, %s2556_s7  ;;  %389 = vst.msk [vmem:[#allocation3 + $0x120] sm:$0xff] %vm172_vm0, %v2804_v60  ;;  %v2115_v1 = vld [vmem:[#allocation2 + $0x170] sm:$0xff]  ;;  %v2526_v4 = vld [vmem:[%s3272_s1 + $0x38] sm:$0xff]   ;;  %v2260_v11 = vunpack.c.l.bf16 %v2294_v6  ;;  %v2261_v12 = vunpack.c.h.bf16 %v2294_v6  ;;  %v2132_v20 = vld [vmem:[#allocation2 + $0xc1] sm:$0xff] }
  0x3d   : > { %1194 = vrot.lane.b32.xlu0 %v2733_v9, %s2556_s7  ;;  %1287 = vst.msk [vmem:[#allocation3 + $0x88] sm:$0xff] %vm172_vm0, %v2785_v50  ;;  %v2295_v7 = vld [vmem:[%s2666_s24 + $0x50] sm:$0xff]   ;;  %v333_v14 = vld [vmem:[#allocation2 + $0x38] sm:$0xff]  ;;  %309 = vst.msk [vmem:[#allocation2 + $0xd9] sm:$0xff] %vm172_vm0, %v2256_v8  ;;  %v2837_v18 = vpack.c.bf16 %v2115_v1, %v2114_v0 }
  0x3e   : > { %2312 = vmatpush3.bf16.msra.mxu0 %v2522_v52  ;;  %2480 = vmatpush3.bf16.msra.mxu1 %v2522_v52  ;;  %v332_v13 = vld [vmem:[#allocation2 + $0x30] sm:$0xff]  ;;  %v2264_v15 = vunpack.c.l.bf16 %v2295_v7  ;;  %v2265_v16 = vunpack.c.h.bf16 %v2295_v7  ;;  %310 = vst.msk [vmem:[#allocation2 + $0xe1] sm:$0xff] %vm172_vm0, %v2257_v10  ;;  %311 = vst.msk [vmem:[#allocation2 + $0xf1] sm:$0xff] %vm172_vm0, %v2260_v11  ;;  %v2070_v24 = vld [vmem:[#allocation2 + $0xc2] sm:$0xff] }
  0x3f   : > { %v362_v17 = vpack.c.bf16 %v333_v14, %v332_v13  ;;  %312 = vst.msk [vmem:[#allocation2 + $0xf9] sm:$0xff] %vm172_vm0, %v2261_v12  ;;  %v2133_v22 = vld [vmem:[#allocation2 + $0xc9] sm:$0xff]  ;;  %v2061_v29 = vld [vmem:[#allocation2 + $0x52] sm:$0xff]  ;;  %v2092_v35 = vld [vmem:[#allocation2 + $0x60] sm:$0xff] }
  0x40   : > { %459 = vrot.lane.b32.xlu1 %v426_v19, %s2555_s28  ;;  %313 = vst.msk [vmem:[#allocation2 + $0x109] sm:$0xff] %vm172_vm0, %v2264_v15  ;;  %314 = vst.msk [vmem:[#allocation2 + $0x111] sm:$0xff] %vm172_vm0, %v2265_v16  ;;  %v2101_v19 = vld [vmem:[#allocation2 + $0xc8] sm:$0xff]  ;;  %v2846_v26 = vpack.c.bf16 %v2133_v22, %v2132_v20  ;;  %v357_v12 = vld [vmem:[#allocation2 + $0x158] sm:$0xff] }
  0x41   : > { %913 = vrot.lane.b32.xlu0 %v2766_v34, %s2555_s28  ;;  %379 = vst.msk [vmem:[#allocation3 + $0x30] sm:$0xff] %vm172_vm0, %v362_v17  ;;  %v2071_v25 = vld [vmem:[#allocation2 + $0xca] sm:$0xff]  ;;  %v2124_v54 = vld [vmem:[#allocation2 + $0x61] sm:$0xff] }
  0x42   : > { %v2060_v28 = vld [vmem:[#allocation2 + $0x4a] sm:$0xff]  ;;  %838 = vst.msk [vmem:[#allocation3 + $0xb0] sm:$0xff] %vm172_vm0, %v2846_v26  ;;  %v2140_v13 = vld [vmem:[#allocation2 + $0x121] sm:$0xff] }
  0x43   : > { %v2093_v36 = vld [vmem:[#allocation2 + $0x68] sm:$0xff]  ;;  %v2864_v42 = vpack.c.bf16 %v2061_v29, %v2060_v28  ;;  %v335_v29 = vld [vmem:[#allocation2 + $0x50] sm:$0xff] }
  0x44   : > { %588 = vrot.lane.b32.xlu1 %v2721_v61, %s2554_s27  ;;  %v2523_v61 = vld [vmem:[%s3272_s1 + $0x70] sm:$0xff]   ;;  %v2102_v32 = vld [vmem:[#allocation2 + $0xd8] sm:$0xff]  ;;  %v2890_v8 = vpack.c.bf16 %v2093_v36, %v2092_v35  ;;  %v2078_v16 = vld [vmem:[#allocation2 + $0x122] sm:$0xff] }
  0x45   : > { %1044 = vrot.lane.b32.xlu0 %v2780_v46, %s2554_s27  ;;  %2313 = vmatprep.subr.bf16.mxu0 %v2523_v61  ;;  %v2134_v33 = vld [vmem:[#allocation2 + $0xd9] sm:$0xff]  ;;  %v2135_v38 = vld [vmem:[#allocation2 + $0xe1] sm:$0xff]  ;;  %v2104_v47 = vld [vmem:[#allocation2 + $0xf0] sm:$0xff] }
  0x46   : > { %2473 = vmatprep.subr.bf16.mxu1 %v2523_v61  ;;  %2314 = vmatpush3.bf16.msra.mxu0 %v2524_v63  ;;  %v2072_v40 = vld [vmem:[#allocation2 + $0xda] sm:$0xff]  ;;  %v2073_v41 = vld [vmem:[#allocation2 + $0xe2] sm:$0xff]  ;;  %v2866_v43 = vpack.c.bf16 %v2135_v38, %v2134_v33  ;;  %v2136_v49 = vld [vmem:[#allocation2 + $0xf1] sm:$0xff] }
  0x47   : > { %2481 = vmatpush3.bf16.msra.mxu1 %v2524_v63  ;;  %2315 = vmatprep.subr.bf16.mxu0 %v2525_v2  ;;  %v2868_v45 = vpack.c.bf16 %v2073_v41, %v2072_v40  ;;  %v2105_v48 = vld [vmem:[#allocation2 + $0xf8] sm:$0xff]  ;;  %v2125_v55 = vld [vmem:[#allocation2 + $0x69] sm:$0xff]  ;;  %v2148_v36 = vld [vmem:[#allocation2 + $0x181] sm:$0xff] }
  0x48   : > { %1172 = vrot.lane.b32.xlu1 %v2743_v23, %s2556_s7  ;;  %2474 = vmatprep.subr.bf16.mxu1 %v2525_v2  ;;  %v2137_v51 = vld [vmem:[#allocation2 + $0xf9] sm:$0xff]  ;;  %v2106_v61 = vld [vmem:[#allocation2 + $0x108] sm:$0xff]  ;;  %v2107_v63 = vld [vmem:[#allocation2 + $0x110] sm:$0xff]  ;;  %839 = vst.msk [vmem:[#allocation3 + $0xc8] sm:$0xff] %vm172_vm0, %v2866_v43  ;;  %v2912_v20 = vpack.c.bf16 %v2125_v55, %v2124_v54 }
  0x49   : > { %937 = vrot.lane.b32.xlu0 %v2802_v56, %s2555_s28  ;;  %v2074_v52 = vld [vmem:[#allocation2 + $0xf2] sm:$0xff]  ;;  %v2075_v53 = vld [vmem:[#allocation2 + $0xfa] sm:$0xff]  ;;  %v2874_v58 = vpack.c.bf16 %v2137_v51, %v2136_v49  ;;  %v2138_v0 = vld [vmem:[#allocation2 + $0x109] sm:$0xff]  ;;  %1289 = vst.msk [vmem:[#allocation3 + $0xb8] sm:$0xff] %vm172_vm0, %v2868_v45 }
  0x4a   : > { %2316 = vmatpush3.bf16.msra.mxu0 %v2526_v4  ;;  %v2876_v59 = vpack.c.bf16 %v2075_v53, %v2074_v52  ;;  %v2084_v1 = vld [vmem:[#allocation2 + $0x16a] sm:$0xff]  ;;  %v2085_v2 = vld [vmem:[#allocation2 + $0x172] sm:$0xff]  ;;  %v2054_v40 = vld [vmem:[#allocation2 + $0x181] sm:$0xff] }
  0x4b   : > { %2482 = vmatpush3.bf16.msra.mxu1 %v2526_v4  ;;  %v2884_v4 = vpack.c.bf16 %v2107_v63, %v2106_v61  ;;  %v2139_v5 = vld [vmem:[#allocation2 + $0x111] sm:$0xff]  ;;  %840 = vst.msk [vmem:[#allocation3 + $0xe0] sm:$0xff] %vm172_vm0, %v2874_v58  ;;  %v2141_v15 = vld [vmem:[#allocation2 + $0x129] sm:$0xff]  ;;  %v2917_v22 = vpack.c.bf16 %v2085_v2, %v2084_v1  ;;  %v2095_v54 = vld [vmem:[#allocation2 + $0x80] sm:$0xff] }
  0x4c   : > { %720 = vrot.lane.b32.xlu1 %v2719_v57, %s2556_s7  ;;  %v2100_v57 = vld [vmem:[#allocation2 + $0xc0] sm:$0xff]  ;;  %v2076_v6 = vld [vmem:[#allocation2 + $0x10a] sm:$0xff]  ;;  %v2077_v7 = vld [vmem:[#allocation2 + $0x112] sm:$0xff]  ;;  %v2892_v10 = vpack.c.bf16 %v2139_v5, %v2138_v0  ;;  %1290 = vst.msk [vmem:[#allocation3 + $0xd0] sm:$0xff] %vm172_vm0, %v2876_v59 }
  0x4d   : > { %483 = vrot.lane.b32.xlu0 %v2747_v27, %s2555_s28  ;;  %v2842_v21 = vpack.c.bf16 %v2101_v19, %v2100_v57  ;;  %v2848_v27 = vpack.c.bf16 %v2071_v25, %v2070_v24  ;;  %v2894_v11 = vpack.c.bf16 %v2077_v7, %v2076_v6  ;;  %v2079_v17 = vld [vmem:[#allocation2 + $0x12a] sm:$0xff]  ;;  %388 = vst.msk [vmem:[#allocation3 + $0x108] sm:$0xff] %vm172_vm0, %v2884_v4  ;;  %v2030_v24 = vld [vmem:[#allocation2 + $0x61] sm:$0xff]  ;;  %v2094_v53 = vld [vmem:[#allocation2 + $0x78] sm:$0xff] }
  0x4e   : > { %v2902_v57 = vpack.c.bf16 %v2141_v15, %v2140_v13  ;;  %v2904_v19 = vpack.c.bf16 %v2079_v17, %v2078_v16  ;;  %841 = vst.msk [vmem:[#allocation3 + $0xf8] sm:$0xff] %vm172_vm0, %v2892_v10  ;;  %v334_v28 = vld [vmem:[#allocation2 + $0x48] sm:$0xff]  ;;  %v359_v51 = vld [vmem:[#allocation2 + $0x170] sm:$0xff]  ;;  %v2950_v55 = vpack.c.bf16 %v2095_v54, %v2094_v53  ;;  %v336_v7 = vld [vmem:[#allocation2 + $0x60] sm:$0xff] }
  0x4f   : > { %385 = vst.msk [vmem:[#allocation3 + $0xc0] sm:$0xff] %vm172_vm0, %v2842_v21  ;;  %1288 = vst.msk [vmem:[#allocation3 + $0xa0] sm:$0xff] %vm172_vm0, %v2848_v27  ;;  %v363_v33 = vpack.c.bf16 %v335_v29, %v334_v28  ;;  %v2149_v38 = vld [vmem:[#allocation2 + $0x189] sm:$0xff]  ;;  %v2127_v61 = vld [vmem:[#allocation2 + $0x81] sm:$0xff] }
  0x50   : > { %612 = vrot.lane.b32.xlu1 %v2729_v3, %s2554_s27  ;;  %v2103_v3 = vld [vmem:[#allocation2 + $0xe0] sm:$0xff]  ;;  %1291 = vst.msk [vmem:[#allocation3 + $0xe8] sm:$0xff] %vm172_vm0, %v2894_v11  ;;  %1292 = vst.msk [vmem:[#allocation3 + $0x100] sm:$0xff] %vm172_vm0, %v2904_v19  ;;  %v2055_v41 = vld [vmem:[#allocation2 + $0x189] sm:$0xff] }
  0x51   : > { %1068 = vrot.lane.b32.xlu0 %v2837_v18, %s2554_s27  ;;  %v2860_v37 = vpack.c.bf16 %v2103_v3, %v2102_v32  ;;  %842 = vst.msk [vmem:[#allocation3 + $0x110] sm:$0xff] %vm172_vm0, %v2902_v57  ;;  %v2116_v32 = vld [vmem:[#allocation2 + $0x180] sm:$0xff]  ;;  %v2117_v3 = vld [vmem:[#allocation2 + $0x188] sm:$0xff]  ;;  %380 = vst.msk [vmem:[#allocation3 + $0x48] sm:$0xff] %vm172_vm0, %v363_v33 }
  0x52   : > { %v2933_v35 = vpack.c.bf16 %v2117_v3, %v2116_v32  ;;  %v2063_v49 = vld [vmem:[#allocation2 + $0x6a] sm:$0xff]  ;;  %v2086_v63 = vld [vmem:[#allocation2 + $0x182] sm:$0xff]  ;;  %v2150_v15 = vld [vmem:[#allocation2 + $0x199] sm:$0xff] }
  0x53   : > { %386 = vst.msk [vmem:[#allocation3 + $0xd8] sm:$0xff] %vm172_vm0, %v2860_v37  ;;  %v2087_v0 = vld [vmem:[#allocation2 + $0x18a] sm:$0xff]  ;;  %v2033_v5 = vld [vmem:[#allocation2 + $0x81] sm:$0xff]  ;;  %v2152_v16 = vld [vmem:[#allocation2 + $0x32] sm:$0xff] }
  0x54   : > { %744 = vrot.lane.b32.xlu1 %v2750_v30, %s2556_s7  ;;  %v2870_v30 = vpack.c.bf16 %v2105_v48, %v2104_v47  ;;  %v1152_v47 = vpack.c.bf16 %v2149_v38, %v2148_v36  ;;  %v830_v48 = vpack.c.bf16 %v2055_v41, %v2054_v40  ;;  %v894_v2 = vpack.c.bf16 %v2087_v0, %v2086_v63  ;;  %v2119_v13 = vld [vmem:[#allocation2 + $0x1a0] sm:$0xff]  ;;  %v2155_v28 = vld [vmem:[#allocation2 + $0x52] sm:$0xff] }
  0x55   : > { %1196 = vrot.lane.b32.xlu0 %v2752_v31, %s2556_s7  ;;  %v2153_v17 = vld [vmem:[#allocation2 + $0x3a] sm:$0xff]  ;;  %v2065_v3 = vld [vmem:[#allocation2 + $0x82] sm:$0xff]  ;;  %v2096_v33 = vld [vmem:[#allocation2 + $0x90] sm:$0xff] }
  0x56   : > { %387 = vst.msk [vmem:[#allocation3 + $0xf0] sm:$0xff] %vm172_vm0, %v2870_v30  ;;  %846 = vst.msk [vmem:[#allocation3 + $0x170] sm:$0xff] %vm172_vm0, %v830_v48  ;;  %v2970_v29 = vld [vmem:[%s3272_s1 + $0x80] sm:$0xff]   ;;  %v2097_v36 = vld [vmem:[#allocation2 + $0x98] sm:$0xff] }
  0x57   : > { %2431 = vmatprep.subr.bf16.mxu1 %v2970_v29  ;;  %v339_v40 = vld [vmem:[#allocation2 + $0x80] sm:$0xff]  ;;  %v2157_v48 = vld [vmem:[#allocation2 + $0x6a] sm:$0xff]  ;;  %v2066_v54 = vld [vmem:[#allocation2 + $0x92] sm:$0xff] }
  0x58   : > { %461 = vrot.lane.b32.xlu1 %v2723_v62, %s2555_s28  ;;  %v356_v62 = vld [vmem:[#allocation2 + $0x150] sm:$0xff]  ;;  %v2156_v41 = vld [vmem:[#allocation2 + $0x62] sm:$0xff]  ;;  %v2161_v53 = vld [vmem:[#allocation2 + $0x9a] sm:$0xff] }
  0x59   : > { %915 = vrot.lane.b32.xlu0 %v2864_v42, %s2555_s28  ;;  %v374_v14 = vpack.c.bf16 %v357_v12, %v356_v62  ;;  %v337_v62 = vld [vmem:[#allocation2 + $0x68] sm:$0xff]  ;;  %v2118_v12 = vld [vmem:[#allocation2 + $0x198] sm:$0xff]  ;;  %v340_v63 = vld [vmem:[#allocation2 + $0x90] sm:$0xff] }
  0x5a   : > { %v341_v0 = vld [vmem:[#allocation2 + $0x98] sm:$0xff] }
  0x5b   : > { %391 = vst.msk [vmem:[#allocation3 + $0x150] sm:$0xff] %vm172_vm0, %v374_v14  ;;  %v364_v14 = vpack.c.bf16 %v337_v62, %v336_v7  ;;  %v343_v7 = vld [vmem:[#allocation2 + $0xb0] sm:$0xff] }
  0x5c   : > { %590 = vrot.lane.b32.xlu1 %v2766_v34, %s2554_s27  ;;  %v2031_v34 = vld [vmem:[#allocation2 + $0x69] sm:$0xff] }
  0x5d   : > { %1046 = vrot.lane.b32.xlu0 %v2890_v8, %s2554_s27  ;;  %v818_v25 = vpack.c.bf16 %v2031_v34, %v2030_v24  ;;  %381 = vst.msk [vmem:[#allocation3 + $0x60] sm:$0xff] %vm172_vm0, %v364_v14  ;;  %v2151_v24 = vld [vmem:[#allocation2 + $0x1a1] sm:$0xff]  ;;  %v1266_v34 = vpack.c.bf16 %v2153_v17, %v2152_v16 }
  0x5e   : > { %v2175_v16 = vld [vmem:[#allocation2 + $0x142] sm:$0xff] }
  0x5f   : > { %834 = vst.msk [vmem:[#allocation3 + $0x50] sm:$0xff] %vm172_vm0, %v818_v25  ;;  %v2154_v25 = vld [vmem:[#allocation2 + $0x4a] sm:$0xff]  ;;  %1282 = vst.msk [vmem:[#allocation3 + $0x10] sm:$0xff] %vm172_vm0, %v1266_v34 }
  0x60   : > { %1174 = vrot.lane.b32.xlu1 %v2912_v20, %s2556_s7  ;;  %v1267_v32 = vpack.c.bf16 %v2155_v28, %v2154_v25 }
  0x61   : > { %939 = vrot.lane.b32.xlu0 %v2917_v22, %s2555_s28 }
  0x62   : > { %1283 = vst.msk [vmem:[#allocation3 + $0x28] sm:$0xff] %vm172_vm0, %v1267_v32  ;;  %v2176_v32 = vld [vmem:[#allocation2 + $0x152] sm:$0xff] }
  0x64   : > { %722 = vrot.lane.b32.xlu1 %v2780_v46, %s2556_s7  ;;  %v2062_v46 = vld [vmem:[#allocation2 + $0x62] sm:$0xff] }
  0x65   : > { %485 = vrot.lane.b32.xlu0 %v2733_v9, %s2555_s28  ;;  %v358_v9 = vld [vmem:[#allocation2 + $0x168] sm:$0xff]  ;;  %v2943_v52 = vpack.c.bf16 %v2063_v49, %v2062_v46  ;;  %v2158_v46 = vld [vmem:[#allocation2 + $0x7a] sm:$0xff] }
  0x66   : > { %v2159_v49 = vld [vmem:[#allocation2 + $0x82] sm:$0xff] }
  0x68   : > { %614 = vrot.lane.b32.xlu1 %v2802_v56, %s2554_s27  ;;  %v375_v56 = vpack.c.bf16 %v359_v51, %v358_v9  ;;  %v1268_v9 = vpack.c.bf16 %v2157_v48, %v2156_v41  ;;  %v1269_v51 = vpack.c.bf16 %v2159_v49, %v2158_v46 }
  0x69   : > { %1070 = vrot.lane.b32.xlu0 %v2933_v35, %s2554_s27 }
  0x6a   : > { %392 = vst.msk [vmem:[#allocation3 + $0x168] sm:$0xff] %vm172_vm0, %v375_v56  ;;  %1284 = vst.msk [vmem:[#allocation3 + $0x40] sm:$0xff] %vm172_vm0, %v1268_v9  ;;  %v2160_v56 = vld [vmem:[#allocation2 + $0x92] sm:$0xff]  ;;  %v2182_v9 = vld [vmem:[#allocation2 + $0x19a] sm:$0xff] }
  0x6b   : > { %1285 = vst.msk [vmem:[#allocation3 + $0x58] sm:$0xff] %vm172_vm0, %v1269_v51  ;;  %v2183_v51 = vld [vmem:[#allocation2 + $0x1a2] sm:$0xff] }
  0x6c   : > { %746 = vrot.lane.b32.xlu1 %v2837_v18, %s2556_s7  ;;  %v2126_v18 = vld [vmem:[#allocation2 + $0x79] sm:$0xff] }
  0x6d   : > { %1198 = vrot.lane.b32.xlu0 %v1152_v47, %s2556_s7  ;;  %v2954_v1 = vpack.c.bf16 %v2127_v61, %v2126_v18  ;;  %v2067_v18 = vld [vmem:[#allocation2 + $0x9a] sm:$0xff]  ;;  %v1270_v61 = vpack.c.bf16 %v2161_v53, %v2160_v56  ;;  %v2528_v53 = vld [vmem:[%s3272_s1 + $0x88] sm:$0xff]  }
  0x6f   : > { %1286 = vst.msk [vmem:[#allocation3 + $0x70] sm:$0xff] %vm172_vm0, %v1270_v61 }
  0x70   : > { %463 = vrot.lane.b32.xlu1 %v2743_v23, %s2555_s28  ;;  %v2032_v23 = vld [vmem:[#allocation2 + $0x79] sm:$0xff] }
  0x71   : > { %917 = vrot.lane.b32.xlu0 %v2943_v52, %s2555_s28  ;;  %v819_v6 = vpack.c.bf16 %v2033_v5, %v2032_v23  ;;  %v366_v23 = vpack.c.bf16 %v341_v0, %v340_v63 }
  0x73   : > { %835 = vst.msk [vmem:[#allocation3 + $0x68] sm:$0xff] %vm172_vm0, %v819_v6  ;;  %383 = vst.msk [vmem:[#allocation3 + $0x90] sm:$0xff] %vm172_vm0, %v366_v23 }
  0x74   : > { %592 = vrot.lane.b32.xlu1 %v2864_v42, %s2554_s27  ;;  %v1025_v42 = vpack.c.bf16 %v2119_v13, %v2118_v12 }
  0x75   : > { %1048 = vrot.lane.b32.xlu0 %v2950_v55, %s2554_s27 }
  0x78   : > { %1176 = vrot.lane.b32.xlu1 %v2954_v1, %s2556_s7 }
  0x79   : > { %941 = vrot.lane.b32.xlu0 %v894_v2, %s2555_s28  ;;  %v2098_v2 = vld [vmem:[#allocation2 + $0xa8] sm:$0xff] }
  0x7c   : > { %724 = vrot.lane.b32.xlu1 %v2890_v8, %s2556_s7  ;;  %v2064_v8 = vld [vmem:[#allocation2 + $0x7a] sm:$0xff] }
  0x7d   : > { %487 = vrot.lane.b32.xlu0 %v2752_v31, %s2555_s28  ;;  %v1153_v31 = vpack.c.bf16 %v2151_v24, %v2150_v15  ;;  %v883_v38 = vpack.c.bf16 %v2065_v3, %v2064_v8  ;;  %v2174_v15 = vld [vmem:[#allocation2 + $0x13a] sm:$0xff] }
  0x7e   : > { %v1277_v24 = vpack.c.bf16 %v2175_v16, %v2174_v15 }
  0x80   : > { %616 = vrot.lane.b32.xlu1 %v2917_v22, %s2554_s27  ;;  %v338_v22 = vld [vmem:[#allocation2 + $0x78] sm:$0xff]  ;;  %1293 = vst.msk [vmem:[#allocation3 + $0x118] sm:$0xff] %vm172_vm0, %v1277_v24 }
  0x81   : > { %1072 = vrot.lane.b32.xlu0 %v1025_v42, %s2554_s27  ;;  %v365_v47 = vpack.c.bf16 %v339_v40, %v338_v22 }
  0x83   : > { %382 = vst.msk [vmem:[#allocation3 + $0x78] sm:$0xff] %vm172_vm0, %v365_v47  ;;  %v2181_v47 = vld [vmem:[#allocation2 + $0x18a] sm:$0xff] }
  0x84   : > { %748 = vrot.lane.b32.xlu1 %v2933_v35, %s2556_s7  ;;  %v1014_v35 = vpack.c.bf16 %v2097_v36, %v2096_v33  ;;  %v587_v5 = vpop.permute.xlu1 %586  ;;  %v2178_v36 = vld [vmem:[#allocation2 + $0x16a] sm:$0xff] }
  0x85   : > { %1200 = vrot.lane.b32.xlu0 %v1153_v31, %s2556_s7  ;;  %v458_v6 = vpop.permute.xlu0 %457  ;;  %v2177_v31 = vld [vmem:[#allocation2 + $0x15a] sm:$0xff] }
  0x86   : > { %506 = vst.msk [vmem:[#allocation3] sm:$0xff] %vm505_vm2, %v458_v6  ;;  %v1278_v33 = vpack.c.bf16 %v2177_v31, %v2176_v32 }
  0x87   : > { %635 = vst.msk [vmem:[#allocation3] sm:$0xff] %vm634_vm3, %v587_v5 }
  0x88   : > { %465 = vrot.lane.b32.xlu1 %v2912_v20, %s2555_s28  ;;  %v884_v20 = vpack.c.bf16 %v2067_v18, %v2066_v54  ;;  %1294 = vst.msk [vmem:[#allocation3 + $0x130] sm:$0xff] %vm172_vm0, %v1278_v33  ;;  %v1281_v54 = vpack.c.bf16 %v2183_v51, %v2182_v9  ;;  %v1303_v9 = vld [vmem:[#allocation3 + $0x28] sm:$0xff] }
  0x89   : > { %919 = vrot.lane.b32.xlu0 %v883_v38, %s2555_s28 }
  0x8a   : > { %1297 = vst.msk [vmem:[#allocation3 + $0x178] sm:$0xff] %vm172_vm0, %v1281_v54 }
  0x8c   : > { %594 = vrot.lane.b32.xlu1 %v2943_v52, %s2554_s27  ;;  %v2099_v52 = vld [vmem:[#allocation2 + $0xb0] sm:$0xff] }
  0x8d   : > { %1050 = vrot.lane.b32.xlu0 %v1014_v35, %s2554_s27 }
  0x90   : > { %726 = vrot.lane.b32.xlu1 %v2950_v55, %s2556_s7  ;;  %v1015_v55 = vpack.c.bf16 %v2099_v52, %v2098_v2 }
  0x91   : > { %1178 = vrot.lane.b32.xlu0 %v2768_v39, %s2556_s7 }
  0x94   : > { %467 = vrot.lane.b32.xlu1 %v2954_v1, %s2555_s28  ;;  %v342_v1 = vld [vmem:[#allocation2 + $0xa8] sm:$0xff] }
  0x95   : > { %921 = vrot.lane.b32.xlu0 %v884_v20, %s2555_s28  ;;  %v367_v12 = vpack.c.bf16 %v343_v7, %v342_v1 }
  0x97   : > { %384 = vst.msk [vmem:[#allocation3 + $0xa8] sm:$0xff] %vm172_vm0, %v367_v12  ;;  %v2111_v12 = vld [vmem:[#allocation2 + $0x140] sm:$0xff] }
  0x98   : > { %596 = vrot.lane.b32.xlu1 %v883_v38, %s2554_s27  ;;  %v2179_v38 = vld [vmem:[#allocation2 + $0x172] sm:$0xff] }
  0x99   : > { %1052 = vrot.lane.b32.xlu0 %v1015_v55, %s2554_s27  ;;  %v1279_v40 = vpack.c.bf16 %v2179_v38, %v2178_v36 }
  0x9b   : > { %1295 = vst.msk [vmem:[#allocation3 + $0x148] sm:$0xff] %vm172_vm0, %v1279_v40 }
  0x9c   : > { %728 = vrot.lane.b32.xlu1 %v1014_v35, %s2556_s7 }
  0x9d   : > { %1180 = vrot.lane.b32.xlu0 %v2771_v44, %s2556_s7 }
  0x9e   : > { %v1043_v62 = vpop.permute.xlu1 %1042 }
  0x9f   : > { %v912_v13 = vpop.permute.xlu0 %911 }
  0xa0   : > { %959 = vst.msk [vmem:[#allocation3 + $0x8] sm:$0xff] %vm505_vm2, %v912_v13  ;;  %469 = vrot.lane.b32.xlu1 %v2768_v39, %s2555_s28 }
  0xa1   : > { %923 = vrot.lane.b32.xlu0 %v2785_v50, %s2555_s28  ;;  %1090 = vst.msk [vmem:[#allocation3 + $0x8] sm:$0xff] %vm634_vm3, %v1043_v62  ;;  %v2110_v62 = vld [vmem:[#allocation2 + $0x138] sm:$0xff] }
  0xa2   : > { %v1171_v14 = vpop.permute.xlu1 %1170 }
  0xa3   : > { %1218 = vst.msk [vmem:[#allocation3 + $0x8] sm:$0xff] %vm766_vm4, %v1171_v14  ;;  %v936_v42 = vpop.permute.xlu0 %935 }
  0xa4   : > { %971 = vst.msk [vmem:[#allocation3 + $0x128] sm:$0xff] %vm505_vm2, %v936_v42  ;;  %598 = vrot.lane.b32.xlu1 %v884_v20, %s2554_s27  ;;  %v2143_v42 = vld [vmem:[#allocation2 + $0x141] sm:$0xff] }
  0xa5   : > { %1054 = vrot.lane.b32.xlu0 %v2842_v21, %s2554_s27 }
  0xa6   : > { %v719_v39 = vpop.permute.xlu1 %718 }
  0xa7   : > { %v482_v17 = vpop.permute.xlu0 %481  ;;  %767 = vst.msk [vmem:[#allocation3] sm:$0xff] %vm766_vm4, %v719_v39 }
  0xa8   : > { %518 = vst.msk [vmem:[#allocation3 + $0x120] sm:$0xff] %vm505_vm2, %v482_v17  ;;  %730 = vrot.lane.b32.xlu1 %v1015_v55, %s2556_s7 }
  0xa9   : > { %1182 = vrot.lane.b32.xlu0 %v2846_v26, %s2556_s7 }
  0xaa   : > { %v611_v34 = vpop.permute.xlu1 %610  ;;  %v1299_v25 = vld [vmem:[#allocation3 + $0x8] sm:$0xff] }
  0xab   : > { %v1067_v28 = vpop.permute.xlu0 %1066  ;;  %647 = vst.msk [vmem:[#allocation3 + $0x120] sm:$0xff] %vm634_vm3, %v611_v34  ;;  %1570 = vmatprep.mubr.bf16.mxu0 %v1299_v25 }
  0xac   : > { %1102 = vst.msk [vmem:[#allocation3 + $0x128] sm:$0xff] %vm634_vm3, %v1067_v28  ;;  %471 = vrot.lane.b32.xlu1 %v2771_v44, %s2555_s28 }
  0xad   : > { %925 = vrot.lane.b32.xlu0 %v2848_v27, %s2555_s28 }
  0xae   : > { %v743_v8 = vpop.permute.xlu1 %742  ;;  %v1298_v3 = vld [vmem:[#allocation3] sm:$0xff] }
  0xaf   : > { %v1195_v22 = vpop.permute.xlu0 %1194  ;;  %779 = vst.msk [vmem:[#allocation3 + $0x120] sm:$0xff] %vm766_vm4, %v743_v8  ;;  %1571 = vmatmul.mubr.bf16.vlgmr.msra.gmra.mrb[0].mxu0 %v1298_v3 }
  0xb0   : > { %1230 = vst.msk [vmem:[#allocation3 + $0x128] sm:$0xff] %vm766_vm4, %v1195_v22  ;;  %600 = vrot.lane.b32.xlu1 %v2785_v50, %s2554_s27  ;;  %v2180_v50 = vld [vmem:[#allocation2 + $0x182] sm:$0xff] }
  0xb1   : > { %1056 = vrot.lane.b32.xlu0 %v2860_v37, %s2554_s27  ;;  %v1280_v49 = vpack.c.bf16 %v2181_v47, %v2180_v50  ;;  %v1300_v47 = vld [vmem:[#allocation3 + $0x10] sm:$0xff] }
  0xb2   : > { %v460_v44 = vpop.permute.xlu1 %459 }
  0xb3   : > { %v914_v41 = vpop.permute.xlu0 %913  ;;  %507 = vst.msk [vmem:[#allocation3 + $0x18] sm:$0xff] %vm505_vm2, %v460_v44 }
  0xb4   : > { %960 = vst.msk [vmem:[#allocation3 + $0x20] sm:$0xff] %vm505_vm2, %v914_v41  ;;  %732 = vrot.lane.b32.xlu1 %v2842_v21, %s2556_s7 }
  0xb5   : > { %1184 = vrot.lane.b32.xlu0 %v2866_v43, %s2556_s7  ;;  %1296 = vst.msk [vmem:[#allocation3 + $0x160] sm:$0xff] %vm172_vm0, %v1280_v49 }
  0xb6   : > { %v589_v48 = vpop.permute.xlu1 %588  ;;  %v1334_v46 = vld [vmem:[#allocation3 + $0x120] sm:$0xff] }
  0xb7   : > { %v1045_v35 = vpop.permute.xlu0 %1044  ;;  %636 = vst.msk [vmem:[#allocation3 + $0x18] sm:$0xff] %vm634_vm3, %v589_v48  ;;  %v1335_v56 = vld [vmem:[#allocation3 + $0x128] sm:$0xff] }
  0xb8   : > { %1091 = vst.msk [vmem:[#allocation3 + $0x20] sm:$0xff] %vm634_vm3, %v1045_v35  ;;  %1666 = vmatprep.mubr.bf16.mxu1 %v1335_v56  ;;  %473 = vrot.lane.b32.xlu1 %v2846_v26, %s2555_s28  ;;  %v1306_v35 = vld [vmem:[#allocation3 + $0x40] sm:$0xff] }
  0xb9   : > { %927 = vrot.lane.b32.xlu0 %v2868_v45, %s2555_s28  ;;  %1667 = vmatmul.mubr.bf16.vlgmr.msra.gmra.mrb[0].mxu1 %v1334_v46 }
  0xba   : > { %v1173_v21 = vpop.permute.xlu1 %1172  ;;  %2432 = vmatpush3.bf16.msra.mxu1 %v2970_v29 }
  0xbb   : > { %v938_v18 = vpop.permute.xlu0 %937  ;;  %1219 = vst.msk [vmem:[#allocation3 + $0x20] sm:$0xff] %vm766_vm4, %v1173_v21  ;;  %2433 = vmatprep.subr.bf16.mxu1 %v2528_v53 }
  0xbc   : > { %972 = vst.msk [vmem:[#allocation3 + $0x140] sm:$0xff] %vm505_vm2, %v938_v18  ;;  %602 = vrot.lane.b32.xlu1 %v2848_v27, %s2554_s27 }
  0xbd   : > { %1058 = vrot.lane.b32.xlu0 %v2870_v30, %s2554_s27 }
  0xbe   : > { %v721_v26 = vpop.permute.xlu1 %720  ;;  %2434 = vmatpush3.bf16.msra.mxu1 %v2528_v53 }
  0xbf   : > { %v484_v61 = vpop.permute.xlu0 %483  ;;  %768 = vst.msk [vmem:[#allocation3 + $0x18] sm:$0xff] %vm766_vm4, %v721_v26  ;;  %v1309_v26 = vld [vmem:[#allocation3 + $0x58] sm:$0xff] }
  0xc0   : > { %519 = vst.msk [vmem:[#allocation3 + $0x138] sm:$0xff] %vm505_vm2, %v484_v61  ;;  %734 = vrot.lane.b32.xlu1 %v2860_v37, %s2556_s7 }
  0xc1   : > { %1186 = vrot.lane.b32.xlu0 %v2874_v58, %s2556_s7 }
  0xc2   : > { %v613_v29 = vpop.permute.xlu1 %612  ;;  %v1302_v20 = vld [vmem:[#allocation3 + $0x20] sm:$0xff] }
  0xc3   : > { %v1069_v63 = vpop.permute.xlu0 %1068  ;;  %648 = vst.msk [vmem:[#allocation3 + $0x138] sm:$0xff] %vm634_vm3, %v613_v29  ;;  %1578 = vmatprep.mubr.bf16.mxu0 %v1302_v20  ;;  %v1312_v29 = vld [vmem:[#allocation3 + $0x70] sm:$0xff] }
  0xc4   : > { %1103 = vst.msk [vmem:[#allocation3 + $0x140] sm:$0xff] %vm634_vm3, %v1069_v63  ;;  %475 = vrot.lane.b32.xlu1 %v2866_v43, %s2555_s28 }
  0xc5   : > { %929 = vrot.lane.b32.xlu0 %v2876_v59, %s2555_s28 }
  0xc6   : > { %v745_v27 = vpop.permute.xlu1 %744  ;;  %v1301_v0 = vld [vmem:[#allocation3 + $0x18] sm:$0xff] }
  0xc7   : > { %v1197_v37 = vpop.permute.xlu0 %1196  ;;  %780 = vst.msk [vmem:[#allocation3 + $0x138] sm:$0xff] %vm766_vm4, %v745_v27  ;;  %1579 = vmatmul.mubr.bf16.gmra.mrb[4].mxu0 %v1301_v0 }
  0xc8   : > { %1231 = vst.msk [vmem:[#allocation3 + $0x140] sm:$0xff] %vm766_vm4, %v1197_v37  ;;  %604 = vrot.lane.b32.xlu1 %v2868_v45, %s2554_s27  ;;  %v1315_v37 = vld [vmem:[#allocation3 + $0x88] sm:$0xff] }
  0xc9   : > { %1060 = vrot.lane.b32.xlu0 %v2884_v4, %s2554_s27 }
  0xca   : > { %v462_v2 = vpop.permute.xlu1 %461 }
  0xcb   : > { %v916_v52 = vpop.permute.xlu0 %915  ;;  %508 = vst.msk [vmem:[#allocation3 + $0x30] sm:$0xff] %vm505_vm2, %v462_v2 }
  0xcc   : > { %961 = vst.msk [vmem:[#allocation3 + $0x38] sm:$0xff] %vm505_vm2, %v916_v52  ;;  %736 = vrot.lane.b32.xlu1 %v2870_v30, %s2556_s7 }
  0xcd   : > { %1188 = vrot.lane.b32.xlu0 %v2892_v10, %s2556_s7 }
  0xce   : > { %v591_v43 = vpop.permute.xlu1 %590  ;;  %v1337_v23 = vld [vmem:[#allocation3 + $0x138] sm:$0xff] }
  0xcf   : > { %v1047_v55 = vpop.permute.xlu0 %1046  ;;  %637 = vst.msk [vmem:[#allocation3 + $0x30] sm:$0xff] %vm634_vm3, %v591_v43  ;;  %v1338_v45 = vld [vmem:[#allocation3 + $0x140] sm:$0xff] }
  0xd0   : > { %1092 = vst.msk [vmem:[#allocation3 + $0x38] sm:$0xff] %vm634_vm3, %v1047_v55  ;;  %1674 = vmatprep.mubr.bf16.mxu1 %v1338_v45  ;;  %477 = vrot.lane.b32.xlu1 %v2874_v58, %s2555_s28  ;;  %v1318_v43 = vld [vmem:[#allocation3 + $0xa0] sm:$0xff] }
  0xd1   : > { %931 = vrot.lane.b32.xlu0 %v2894_v11, %s2555_s28  ;;  %1675 = vmatmul.mubr.bf16.gmra.mrb[4].mxu1 %v1337_v23 }
  0xd2   : > { %v1175_v30 = vpop.permute.xlu1 %1174 }
  0xd3   : > { %v940_v5 = vpop.permute.xlu0 %939  ;;  %1220 = vst.msk [vmem:[#allocation3 + $0x38] sm:$0xff] %vm766_vm4, %v1175_v30  ;;  %v1321_v30 = vld [vmem:[#allocation3 + $0xb8] sm:$0xff] }
  0xd4   : > { %973 = vst.msk [vmem:[#allocation3 + $0x158] sm:$0xff] %vm505_vm2, %v940_v5  ;;  %606 = vrot.lane.b32.xlu1 %v2876_v59, %s2554_s27 }
  0xd5   : > { %1062 = vrot.lane.b32.xlu0 %v2804_v60, %s2554_s27 }
  0xd6   : > { %v723_v6 = vpop.permute.xlu1 %722 }
  0xd7   : > { %v486_v1 = vpop.permute.xlu0 %485  ;;  %769 = vst.msk [vmem:[#allocation3 + $0x30] sm:$0xff] %vm766_vm4, %v723_v6  ;;  %v1324_v6 = vld [vmem:[#allocation3 + $0xd0] sm:$0xff] }
  0xd8   : > { %520 = vst.msk [vmem:[#allocation3 + $0x150] sm:$0xff] %vm505_vm2, %v486_v1  ;;  %738 = vrot.lane.b32.xlu1 %v2884_v4, %s2556_s7  ;;  %v1021_v4 = vpack.c.bf16 %v2111_v12, %v2110_v62 }
  0xd9   : > { %1190 = vrot.lane.b32.xlu0 %v2902_v57, %s2556_s7  ;;  %v2142_v57 = vld [vmem:[#allocation2 + $0x139] sm:$0xff] }
  0xda   : > { %v615_v58 = vpop.permute.xlu1 %614  ;;  %v1305_v7 = vld [vmem:[#allocation3 + $0x38] sm:$0xff] }
  0xdb   : > { %v1071_v59 = vpop.permute.xlu0 %1070  ;;  %649 = vst.msk [vmem:[#allocation3 + $0x150] sm:$0xff] %vm634_vm3, %v615_v58  ;;  %1586 = vmatprep.mubr.bf16.mxu0 %v1305_v7 }
  0xdc   : > { %1104 = vst.msk [vmem:[#allocation3 + $0x158] sm:$0xff] %vm634_vm3, %v1071_v59  ;;  %479 = vrot.lane.b32.xlu1 %v2892_v10, %s2555_s28  ;;  %v1149_v10 = vpack.c.bf16 %v2143_v42, %v2142_v57  ;;  %v1327_v59 = vld [vmem:[#allocation3 + $0xe8] sm:$0xff] }
  0xdd   : > { %933 = vrot.lane.b32.xlu0 %v2904_v19, %s2555_s28 }
  0xde   : > { %v747_v13 = vpop.permute.xlu1 %746  ;;  %v1304_v14 = vld [vmem:[#allocation3 + $0x30] sm:$0xff] }
  0xdf   : > { %v1199_v39 = vpop.permute.xlu0 %1198  ;;  %781 = vst.msk [vmem:[#allocation3 + $0x150] sm:$0xff] %vm766_vm4, %v747_v13  ;;  %1587 = vmatmul.mubr.bf16.gmra.mrb[8].mxu0 %v1304_v14  ;;  %v1330_v13 = vld [vmem:[#allocation3 + $0x100] sm:$0xff] }
  0xe0   : > { %1232 = vst.msk [vmem:[#allocation3 + $0x158] sm:$0xff] %vm766_vm4, %v1199_v39  ;;  %608 = vrot.lane.b32.xlu1 %v2894_v11, %s2554_s27 }
  0xe1   : > { %1064 = vrot.lane.b32.xlu0 %v1021_v4, %s2554_s27  ;;  %s2221_s27 = sshll.u32 %s3279_s9, 8 }
  0xe2   : > { %v464_v15 = vpop.permute.xlu1 %463 }
  0xe3   : > { %v918_v16 = vpop.permute.xlu0 %917  ;;  %509 = vst.msk [vmem:[#allocation3 + $0x48] sm:$0xff] %vm505_vm2, %v464_v15 }
  0xe4   : > { %962 = vst.msk [vmem:[#allocation3 + $0x50] sm:$0xff] %vm505_vm2, %v918_v16  ;;  %740 = vrot.lane.b32.xlu1 %v2804_v60, %s2556_s7 }
  0xe5   : > { %1192 = vrot.lane.b32.xlu0 %v1149_v10, %s2556_s7  ;;  %v1333_v10 = vld [vmem:[#allocation3 + $0x118] sm:$0xff]  ;;  %s3214_s7 = scalar_lea.vmem %s3273_s2, %s2221_s27 }
  0xe6   : > { %v593_v19 = vpop.permute.xlu1 %592  ;;  %v1340_v17 = vld [vmem:[#allocation3 + $0x150] sm:$0xff] }
  0xe7   : > { %v1049_v24 = vpop.permute.xlu0 %1048  ;;  %638 = vst.msk [vmem:[#allocation3 + $0x48] sm:$0xff] %vm634_vm3, %v593_v19  ;;  %v1341_v11 = vld [vmem:[#allocation3 + $0x158] sm:$0xff]  ;;  %v1336_v19 = vld [vmem:[#allocation3 + $0x130] sm:$0xff] }
  0xe8   : > { %1093 = vst.msk [vmem:[#allocation3 + $0x50] sm:$0xff] %vm634_vm3, %v1049_v24  ;;  %1682 = vmatprep.mubr.bf16.mxu1 %v1341_v11 }
  0xe9   : > { %1683 = vmatmul.mubr.bf16.gmra.mrb[8].mxu1 %v1340_v17 }
  0xea   : > { %v1177_v34 = vpop.permute.xlu1 %1176 }
  0xeb   : > { %v942_v25 = vpop.permute.xlu0 %941  ;;  %1221 = vst.msk [vmem:[#allocation3 + $0x50] sm:$0xff] %vm766_vm4, %v1177_v34  ;;  %v1339_v34 = vld [vmem:[#allocation3 + $0x148] sm:$0xff] }
  0xec   : > { %974 = vst.msk [vmem:[#allocation3 + $0x170] sm:$0xff] %vm505_vm2, %v942_v25 }
  0xee   : > { %v725_v28 = vpop.permute.xlu1 %724 }
  0xef   : > { %v488_v60 = vpop.permute.xlu0 %487  ;;  %770 = vst.msk [vmem:[#allocation3 + $0x48] sm:$0xff] %vm766_vm4, %v725_v28  ;;  %v1342_v28 = vld [vmem:[#allocation3 + $0x160] sm:$0xff] }
  0xf0   : > { %521 = vst.msk [vmem:[#allocation3 + $0x168] sm:$0xff] %vm505_vm2, %v488_v60 }
  0xf2   : > { %v617_v32 = vpop.permute.xlu1 %616  ;;  %v1308_v31 = vld [vmem:[#allocation3 + $0x50] sm:$0xff] }
  0xf3   : > { %v1073_v8 = vpop.permute.xlu0 %1072  ;;  %650 = vst.msk [vmem:[#allocation3 + $0x168] sm:$0xff] %vm634_vm3, %v617_v32  ;;  %1594 = vmatprep.mubr.bf16.mxu0 %v1308_v31 }
  0xf4   : > { %1105 = vst.msk [vmem:[#allocation3 + $0x170] sm:$0xff] %vm634_vm3, %v1073_v8 }
  0xf6   : > { %v749_v3 = vpop.permute.xlu1 %748  ;;  %v1307_v33 = vld [vmem:[#allocation3 + $0x48] sm:$0xff] }
  0xf7   : > { %v1201_v36 = vpop.permute.xlu0 %1200  ;;  %782 = vst.msk [vmem:[#allocation3 + $0x168] sm:$0xff] %vm766_vm4, %v749_v3  ;;  %1595 = vmatmul.mubr.bf16.gmra.mrb[12].mxu0 %v1307_v33  ;;  %v1345_v33 = vld [vmem:[#allocation3 + $0x178] sm:$0xff] }
  0xf8   : > { %1233 = vst.msk [vmem:[#allocation3 + $0x170] sm:$0xff] %vm766_vm4, %v1201_v36 }
  0xfa   : > { %v466_v38 = vpop.permute.xlu1 %465 }
  0xfb   : > { %v920_v22 = vpop.permute.xlu0 %919  ;;  %510 = vst.msk [vmem:[#allocation3 + $0x60] sm:$0xff] %vm505_vm2, %v466_v38 }
  0xfc   : > { %963 = vst.msk [vmem:[#allocation3 + $0x68] sm:$0xff] %vm505_vm2, %v920_v22 }
  0xfe   : > { %v595_v40 = vpop.permute.xlu1 %594  ;;  %v1343_v44 = vld [vmem:[#allocation3 + $0x168] sm:$0xff] }
  0xff   : > { %v1051_v41 = vpop.permute.xlu0 %1050  ;;  %v1344_v50 = vld [vmem:[#allocation3 + $0x170] sm:$0xff]  ;;  %639 = vst.msk [vmem:[#allocation3 + $0x60] sm:$0xff] %vm634_vm3, %v595_v40 }
 0x100   : > { %1094 = vst.msk [vmem:[#allocation3 + $0x68] sm:$0xff] %vm634_vm3, %v1051_v41  ;;  %1690 = vmatprep.mubr.bf16.mxu1 %v1344_v50 }
 0x101   : > { %1691 = vmatmul.mubr.bf16.gmra.mrb[12].mxu1 %v1343_v44 }
 0x102   : > { %v727_v48 = vpop.permute.xlu1 %726  ;;  %2435 = vmatprep.mubr.msk.bf16.mxu1 %vm172_vm0, %v1300_v47 }
 0x103   : > { %v1179_v46 = vpop.permute.xlu0 %1178  ;;  %771 = vst.msk [vmem:[#allocation3 + $0x60] sm:$0xff] %vm766_vm4, %v727_v48 }
 0x104   : > { %1222 = vst.msk [vmem:[#allocation3 + $0x68] sm:$0xff] %vm766_vm4, %v1179_v46 }
 0x106   : > { %v468_v49 = vpop.permute.xlu1 %467 }
 0x107   : > { %v922_v51 = vpop.permute.xlu0 %921  ;;  %511 = vst.msk [vmem:[#allocation3 + $0x78] sm:$0xff] %vm505_vm2, %v468_v49 }
 0x108   : > { %964 = vst.msk [vmem:[#allocation3 + $0x80] sm:$0xff] %vm505_vm2, %v922_v51 }
 0x109   : > { %2436 = vmatmul.mubr.msk.bf16.vlgmr.msra.gmra.mrb[16].mxu1 %vm172_vm0, %v1303_v9 }
 0x10a   : > { %v597_v56 = vpop.permute.xlu1 %596  ;;  %v1310_v53 = vld [vmem:[#allocation3 + $0x60] sm:$0xff]  ;;  %2439 = vmatprep.mubr.msk.bf16.mxu1 %vm172_vm0, %v1306_v35 }
 0x10b   : > { %v1053_v54 = vpop.permute.xlu0 %1052  ;;  %640 = vst.msk [vmem:[#allocation3 + $0x78] sm:$0xff] %vm634_vm3, %v597_v56  ;;  %v1311_v21 = vld [vmem:[#allocation3 + $0x68] sm:$0xff] }
 0x10c   : > { %1095 = vst.msk [vmem:[#allocation3 + $0x80] sm:$0xff] %vm634_vm3, %v1053_v54  ;;  %1602 = vmatprep.mubr.bf16.mxu0 %v1311_v21 }
 0x10d   : > { %1603 = vmatmul.mubr.bf16.gmra.mrb[16].mxu0 %v1310_v53 }
 0x10e   : > { %v729_v18 = vpop.permute.xlu1 %728 }
 0x10f   : > { %v1181_v61 = vpop.permute.xlu0 %1180  ;;  %772 = vst.msk [vmem:[#allocation3 + $0x78] sm:$0xff] %vm766_vm4, %v729_v18 }
 0x110   : > { %1223 = vst.msk [vmem:[#allocation3 + $0x80] sm:$0xff] %vm766_vm4, %v1181_v61 }
 0x111   : > { %2440 = vmatmul.mubr.msk.bf16.gmra.mrb[20].mxu1 %vm172_vm0, %v1309_v26 }
 0x112   : > { %v470_v20 = vpop.permute.xlu1 %469  ;;  %2443 = vmatprep.mubr.msk.bf16.mxu1 %vm172_vm0, %v1312_v29 }
 0x113   : > { %v924_v63 = vpop.permute.xlu0 %923  ;;  %512 = vst.msk [vmem:[#allocation3 + $0x90] sm:$0xff] %vm505_vm2, %v470_v20 }
 0x114   : > { %965 = vst.msk [vmem:[#allocation3 + $0x98] sm:$0xff] %vm505_vm2, %v924_v63 }
 0x116   : > { %v599_v27 = vpop.permute.xlu1 %598  ;;  %v1313_v0 = vld [vmem:[#allocation3 + $0x78] sm:$0xff] }
 0x117   : > { %v1055_v2 = vpop.permute.xlu0 %1054  ;;  %641 = vst.msk [vmem:[#allocation3 + $0x90] sm:$0xff] %vm634_vm3, %v599_v27  ;;  %v1314_v52 = vld [vmem:[#allocation3 + $0x80] sm:$0xff] }
 0x118   : > { %1096 = vst.msk [vmem:[#allocation3 + $0x98] sm:$0xff] %vm634_vm3, %v1055_v2  ;;  %1610 = vmatprep.mubr.bf16.mxu0 %v1314_v52 }
 0x119   : > { %1611 = vmatmul.mubr.bf16.gmra.mrb[20].mxu0 %v1313_v0  ;;  %2444 = vmatmul.mubr.msk.bf16.gmra.mrb[24].mxu1 %vm172_vm0, %v1315_v37 }
 0x11a   : > { %v731_v23 = vpop.permute.xlu1 %730  ;;  %2447 = vmatprep.mubr.msk.bf16.mxu1 %vm172_vm0, %v1318_v43 }
 0x11b   : > { %v1183_v55 = vpop.permute.xlu0 %1182  ;;  %773 = vst.msk [vmem:[#allocation3 + $0x90] sm:$0xff] %vm766_vm4, %v731_v23 }
 0x11c   : > { %1224 = vst.msk [vmem:[#allocation3 + $0x98] sm:$0xff] %vm766_vm4, %v1183_v55 }
 0x11e   : > { %v472_v45 = vpop.permute.xlu1 %471 }
 0x11f   : > { %v926_v5 = vpop.permute.xlu0 %925  ;;  %513 = vst.msk [vmem:[#allocation3 + $0xa8] sm:$0xff] %vm505_vm2, %v472_v45 }
 0x120   : > { %966 = vst.msk [vmem:[#allocation3 + $0xb0] sm:$0xff] %vm505_vm2, %v926_v5 }
 0x121   : > { %2448 = vmatmul.mubr.msk.bf16.gmra.mrb[28].mxu1 %vm172_vm0, %v1321_v30 }
 0x122   : > { %v601_v1 = vpop.permute.xlu1 %600  ;;  %v1316_v58 = vld [vmem:[#allocation3 + $0x90] sm:$0xff]  ;;  %2451 = vmatprep.mubr.msk.bf16.mxu1 %vm172_vm0, %v1324_v6 }
 0x123   : > { %v1057_v7 = vpop.permute.xlu0 %1056  ;;  %642 = vst.msk [vmem:[#allocation3 + $0xa8] sm:$0xff] %vm634_vm3, %v601_v1  ;;  %v1317_v62 = vld [vmem:[#allocation3 + $0x98] sm:$0xff] }
 0x124   : > { %1097 = vst.msk [vmem:[#allocation3 + $0xb0] sm:$0xff] %vm634_vm3, %v1057_v7  ;;  %1618 = vmatprep.mubr.bf16.mxu0 %v1317_v62 }
 0x125   : > { %1619 = vmatmul.mubr.bf16.gmra.mrb[24].mxu0 %v1316_v58 }
 0x126   : > { %v733_v12 = vpop.permute.xlu1 %732 }
 0x127   : > { %v1185_v4 = vpop.permute.xlu0 %1184  ;;  %774 = vst.msk [vmem:[#allocation3 + $0xa8] sm:$0xff] %vm766_vm4, %v733_v12 }
 0x128   : > { %1225 = vst.msk [vmem:[#allocation3 + $0xb0] sm:$0xff] %vm766_vm4, %v1185_v4 }
 0x129   : > { %2452 = vmatmul.mubr.msk.bf16.gmra.mrb[32].mxu1 %vm172_vm0, %v1327_v59 }
 0x12a   : > { %v474_v14 = vpop.permute.xlu1 %473  ;;  %2455 = vmatprep.mubr.msk.bf16.mxu1 %vm172_vm0, %v1330_v13 }
 0x12b   : > { %v928_v57 = vpop.permute.xlu0 %927  ;;  %514 = vst.msk [vmem:[#allocation3 + $0xc0] sm:$0xff] %vm505_vm2, %v474_v14 }
 0x12c   : > { %967 = vst.msk [vmem:[#allocation3 + $0xc8] sm:$0xff] %vm505_vm2, %v928_v57 }
 0x12e   : > { %v603_v42 = vpop.permute.xlu1 %602  ;;  %v1319_v39 = vld [vmem:[#allocation3 + $0xa8] sm:$0xff] }
 0x12f   : > { %v1059_v15 = vpop.permute.xlu0 %1058  ;;  %643 = vst.msk [vmem:[#allocation3 + $0xc0] sm:$0xff] %vm634_vm3, %v603_v42  ;;  %v1320_v16 = vld [vmem:[#allocation3 + $0xb0] sm:$0xff] }
 0x130   : > { %1098 = vst.msk [vmem:[#allocation3 + $0xc8] sm:$0xff] %vm634_vm3, %v1059_v15  ;;  %1626 = vmatprep.mubr.bf16.mxu0 %v1320_v16 }
 0x131   : > { %1627 = vmatmul.mubr.bf16.gmra.mrb[28].mxu0 %v1319_v39  ;;  %2456 = vmatmul.mubr.msk.bf16.gmra.mrb[36].mxu1 %vm172_vm0, %v1333_v10 }
 0x132   : > { %v735_v17 = vpop.permute.xlu1 %734  ;;  %2459 = vmatprep.mubr.msk.bf16.mxu1 %vm172_vm0, %v1336_v19 }
 0x133   : > { %v1187_v24 = vpop.permute.xlu0 %1186  ;;  %775 = vst.msk [vmem:[#allocation3 + $0xc0] sm:$0xff] %vm766_vm4, %v735_v17 }
 0x134   : > { %1226 = vst.msk [vmem:[#allocation3 + $0xc8] sm:$0xff] %vm766_vm4, %v1187_v24 }
 0x136   : > { %v476_v11 = vpop.permute.xlu1 %475 }
 0x137   : > { %v930_v25 = vpop.permute.xlu0 %929  ;;  %515 = vst.msk [vmem:[#allocation3 + $0xd8] sm:$0xff] %vm505_vm2, %v476_v11 }
 0x138   : > { %968 = vst.msk [vmem:[#allocation3 + $0xe0] sm:$0xff] %vm505_vm2, %v930_v25 }
 0x139   : > { %2460 = vmatmul.mubr.msk.bf16.gmra.mrb[40].mxu1 %vm172_vm0, %v1339_v34 }
 0x13a   : > { %v605_v60 = vpop.permute.xlu1 %604  ;;  %v1322_v32 = vld [vmem:[#allocation3 + $0xc0] sm:$0xff]  ;;  %2463 = vmatprep.mubr.msk.bf16.mxu1 %vm172_vm0, %v1342_v28 }
 0x13b   : > { %v1061_v31 = vpop.permute.xlu0 %1060  ;;  %644 = vst.msk [vmem:[#allocation3 + $0xd8] sm:$0xff] %vm634_vm3, %v605_v60  ;;  %v1323_v8 = vld [vmem:[#allocation3 + $0xc8] sm:$0xff] }
 0x13c   : > { %1099 = vst.msk [vmem:[#allocation3 + $0xe0] sm:$0xff] %vm634_vm3, %v1061_v31  ;;  %1634 = vmatprep.mubr.bf16.mxu0 %v1323_v8 }
 0x13d   : > { %1635 = vmatmul.mubr.bf16.gmra.mrb[32].mxu0 %v1322_v32 }
 0x13e   : > { %v737_v3 = vpop.permute.xlu1 %736 }
 0x13f   : > { %v1189_v36 = vpop.permute.xlu0 %1188  ;;  %776 = vst.msk [vmem:[#allocation3 + $0xd8] sm:$0xff] %vm766_vm4, %v737_v3 }
 0x140   : > { %1227 = vst.msk [vmem:[#allocation3 + $0xe0] sm:$0xff] %vm766_vm4, %v1189_v36 }
 0x141   : > { %2464 = vmatmul.mubr.msk.bf16.gmra.mrb[44].mxu1 %vm172_vm0, %v1345_v33 }
 0x142   : > { %v478_v38 = vpop.permute.xlu1 %477 }
 0x143   : > { %v932_v22 = vpop.permute.xlu0 %931  ;;  %516 = vst.msk [vmem:[#allocation3 + $0xf0] sm:$0xff] %vm505_vm2, %v478_v38 }
 0x144   : > { %969 = vst.msk [vmem:[#allocation3 + $0xf8] sm:$0xff] %vm505_vm2, %v932_v22 }
 0x146   : > { %v607_v40 = vpop.permute.xlu1 %606  ;;  %v1325_v44 = vld [vmem:[#allocation3 + $0xd8] sm:$0xff] }
 0x147   : > { %v1063_v41 = vpop.permute.xlu0 %1062  ;;  %645 = vst.msk [vmem:[#allocation3 + $0xf0] sm:$0xff] %vm634_vm3, %v607_v40  ;;  %v1326_v50 = vld [vmem:[#allocation3 + $0xe0] sm:$0xff] }
 0x148   : > { %1100 = vst.msk [vmem:[#allocation3 + $0xf8] sm:$0xff] %vm634_vm3, %v1063_v41  ;;  %1642 = vmatprep.mubr.bf16.mxu0 %v1326_v50 }
 0x149   : > { %1643 = vmatmul.mubr.bf16.gmra.mrb[36].mxu0 %v1325_v44 }
 0x14a   : > { %v739_v47 = vpop.permute.xlu1 %738 }
 0x14b   : > { %v1191_v48 = vpop.permute.xlu0 %1190  ;;  %777 = vst.msk [vmem:[#allocation3 + $0xf0] sm:$0xff] %vm766_vm4, %v739_v47 }
 0x14c   : > { %1228 = vst.msk [vmem:[#allocation3 + $0xf8] sm:$0xff] %vm766_vm4, %v1191_v48 }
 0x14e   : > { %v480_v46 = vpop.permute.xlu1 %479 }
 0x14f   : > { %v934_v49 = vpop.permute.xlu0 %933  ;;  %517 = vst.msk [vmem:[#allocation3 + $0x108] sm:$0xff] %vm505_vm2, %v480_v46 }
 0x150   : > { %970 = vst.msk [vmem:[#allocation3 + $0x110] sm:$0xff] %vm505_vm2, %v934_v49 }
 0x152   : > { %v609_v9 = vpop.permute.xlu1 %608  ;;  %v1328_v51 = vld [vmem:[#allocation3 + $0xf0] sm:$0xff] }
 0x153   : > { %v1065_v35 = vpop.permute.xlu0 %1064  ;;  %646 = vst.msk [vmem:[#allocation3 + $0x108] sm:$0xff] %vm634_vm3, %v609_v9  ;;  %v1329_v56 = vld [vmem:[#allocation3 + $0xf8] sm:$0xff] }
 0x154   : > { %1101 = vst.msk [vmem:[#allocation3 + $0x110] sm:$0xff] %vm634_vm3, %v1065_v35  ;;  %1650 = vmatprep.mubr.bf16.mxu0 %v1329_v56 }
 0x155   : > { %1651 = vmatmul.mubr.bf16.gmra.mrb[40].mxu0 %v1328_v51 }
 0x156   : > { %v741_v53 = vpop.permute.xlu1 %740 }
 0x157   : > { %v1193_v54 = vpop.permute.xlu0 %1192  ;;  %778 = vst.msk [vmem:[#allocation3 + $0x108] sm:$0xff] %vm766_vm4, %v741_v53 }
 0x158   : > { %1229 = vst.msk [vmem:[#allocation3 + $0x110] sm:$0xff] %vm766_vm4, %v1193_v54 }
 0x15e   : > { %v1331_v21 = vld [vmem:[#allocation3 + $0x108] sm:$0xff] }
 0x15f   : > { %v1332_v18 = vld [vmem:[#allocation3 + $0x110] sm:$0xff] }
 0x160   : > { %1658 = vmatprep.mubr.bf16.mxu0 %v1332_v18 }
 0x161   : > { %1659 = vmatmul.mubr.bf16.gmra.mrb[44].mxu0 %v1331_v21 }
 0x182   : > { %v2317_v26 = vpop.f32.mrb[0].mxu0 }
 0x183   : > { %v2318_v61 = vpop.f32.mrb[1].mxu0 }
 0x184   : > { %v2319_v29 = vadd.f32 %v2318_v61, %v2317_v26  ;;  %v2320_v20 = vpop.f32.mrb[2].mxu0 }
 0x185   : > { %v2321_v63 = vpop.f32.mrb[3].mxu0 }
 0x186   : > { %v2322_v27 = vadd.f32 %v2321_v63, %v2320_v20 }
 0x18c   : > { %v2389_v0 = vpop.f32.mrb[0].mxu1 }
 0x18d   : > { %v2390_v37 = vpop.f32.mrb[1].mxu1 }
 0x18e   : > { %v3194_v2 = vadd.f32 %v2390_v37, %v2389_v0  ;;  %v2392_v52 = vpop.f32.mrb[2].mxu1 }
 0x18f   : > { %v2393_v43 = vpop.f32.mrb[3].mxu1 }
 0x190   : > { %v3196_v23 = vadd.f32 %v2393_v43, %v2392_v52 }
 0x19a   : > { %v2323_v55 = vpop.f32.mrb[4].mxu0 }
 0x19b   : > { %v2324_v45 = vpop.f32.mrb[5].mxu0 }
 0x19c   : > { %v2325_v30 = vadd.f32 %v2324_v45, %v2323_v55  ;;  %v2326_v5 = vpop.f32.mrb[6].mxu0 }
 0x19d   : > { %v2327_v6 = vpop.f32.mrb[7].mxu0 }
 0x19e   : > { %v2328_v1 = vadd.f32 %v2327_v6, %v2326_v5 }
 0x1a4   : > { %v2395_v58 = vpop.f32.mrb[4].mxu1 }
 0x1a5   : > { %v2396_v7 = vpop.f32.mrb[5].mxu1 }
 0x1a6   : > { %v3198_v62 = vadd.f32 %v2396_v7, %v2395_v58  ;;  %v2398_v12 = vpop.f32.mrb[6].mxu1 }
 0x1a7   : > { %v2399_v59 = vpop.f32.mrb[7].mxu1 }
 0x1a8   : > { %v3200_v4 = vadd.f32 %v2399_v59, %v2398_v12 }
 0x1b2   : > { %v2329_v13 = vpop.f32.mrb[8].mxu0 }
 0x1b3   : > { %v2330_v14 = vpop.f32.mrb[9].mxu0 }
 0x1b4   : > { %v2331_v57 = vadd.f32 %v2330_v14, %v2329_v13  ;;  %v2332_v42 = vpop.f32.mrb[10].mxu0 }
 0x1b5   : > { %v2333_v39 = vpop.f32.mrb[11].mxu0 }
 0x1b6   : > { %v2334_v10 = vadd.f32 %v2333_v39, %v2332_v42 }
 0x1bc   : > { %v2401_v15 = vpop.f32.mrb[8].mxu1 }
 0x1bd   : > { %v2402_v16 = vpop.f32.mrb[9].mxu1 }
 0x1be   : > { %v3202_v19 = vadd.f32 %v2402_v16, %v2401_v15  ;;  %v2404_v17 = vpop.f32.mrb[10].mxu1 }
 0x1bf   : > { %v2405_v24 = vpop.f32.mrb[11].mxu1 }
 0x1c0   : > { %v3204_v11 = vadd.f32 %v2405_v24, %v2404_v17 }
 0x1ca   : > { %v2335_v34 = vpop.f32.mrb[12].mxu0 }
 0x1cb   : > { %v2336_v25 = vpop.f32.mrb[13].mxu0 }
 0x1cc   : > { %v2337_v28 = vadd.f32 %v2336_v25, %v2335_v34  ;;  %v2338_v60 = vpop.f32.mrb[14].mxu0 }
 0x1cd   : > { %v2339_v32 = vpop.f32.mrb[15].mxu0 }
 0x1ce   : > { %v2340_v31 = vadd.f32 %v2339_v32, %v2338_v60 }
 0x1d4   : > { %v2407_v8 = vpop.f32.mrb[12].mxu1 }
 0x1d5   : > { %v2408_v3 = vpop.f32.mrb[13].mxu1 }
 0x1d6   : > { %v3206_v33 = vadd.f32 %v2408_v3, %v2407_v8  ;;  %v2410_v36 = vpop.f32.mrb[14].mxu1 }
 0x1d7   : > { %v2411_v38 = vpop.f32.mrb[15].mxu1 }
 0x1d8   : > { %v3208_v22 = vadd.f32 %v2411_v38, %v2410_v36 }
 0x1dc   : > { %v2437_v40 = vpop.f32.mrb[16].mxu1 }
 0x1dd   : > { %v1742_v44 = vadd.f32 %v2437_v40, %v2325_v30  ;;  %v1733_v41 = vpop.f32.mrb[17].mxu1 }
 0x1de   : > { %v1734_v50 = vadd.f32 %v2319_v29, %v1733_v41  ;;  %v2438_v47 = vpop.f32.mrb[18].mxu1 }
 0x1df   : > { %1862 = vst [vmem:[%s3214_s7 + $0x10] sm:$0xff] %v1742_v44  ;;  %v1745_v48 = vadd.f32 %v2438_v47, %v2328_v1  ;;  %v1736_v46 = vpop.f32.mrb[19].mxu1 }
 0x1e0   : > { %1860 = vst [vmem:[%s3214_s7] sm:$0xff] %v1734_v50  ;;  %v1737_v49 = vadd.f32 %v2322_v27, %v1736_v46  ;;  %v2341_v9 = vpop.f32.mrb[16].mxu0 }
 0x1e1   : > { %1863 = vst [vmem:[%s3214_s7 + $0x18] sm:$0xff] %v1745_v48  ;;  %v2342_v51 = vpop.f32.mrb[17].mxu0 }
 0x1e2   : > { %1861 = vst [vmem:[%s3214_s7 + $0x8] sm:$0xff] %v1737_v49  ;;  %v2343_v35 = vadd.f32 %v2342_v51, %v2341_v9  ;;  %v2344_v56 = vpop.f32.mrb[18].mxu0 }
 0x1e3   : > { %v2345_v53 = vpop.f32.mrb[19].mxu0 }
 0x1e4   : > { %v2346_v54 = vadd.f32 %v2345_v53, %v2344_v56  ;;  %v2441_v21 = vpop.f32.mrb[20].mxu1 }
 0x1e5   : > { %v1758_v18 = vadd.f32 %v2441_v21, %v2337_v28  ;;  %v1749_v26 = vpop.f32.mrb[21].mxu1 }
 0x1e6   : > { %v1750_v61 = vadd.f32 %v2331_v57, %v1749_v26  ;;  %v2442_v29 = vpop.f32.mrb[22].mxu1 }
 0x1e7   : > { %1866 = vst [vmem:[%s3214_s7 + $0x30] sm:$0xff] %v1758_v18  ;;  %v1761_v20 = vadd.f32 %v2442_v29, %v2340_v31  ;;  %v1752_v63 = vpop.f32.mrb[23].mxu1 }
 0x1e8   : > { %1864 = vst [vmem:[%s3214_s7 + $0x20] sm:$0xff] %v1750_v61  ;;  %v1753_v27 = vadd.f32 %v2334_v10, %v1752_v63 }
 0x1e9   : > { %1867 = vst [vmem:[%s3214_s7 + $0x38] sm:$0xff] %v1761_v20 }
 0x1ea   : > { %1865 = vst [vmem:[%s3214_s7 + $0x28] sm:$0xff] %v1753_v27 }
 0x1ec   : > { %v2347_v0 = vpop.f32.mrb[20].mxu0  ;;  %v2445_v37 = vpop.f32.mrb[24].mxu1 }
 0x1ed   : > { %v2348_v52 = vpop.f32.mrb[21].mxu0  ;;  %v1765_v43 = vpop.f32.mrb[25].mxu1 }
 0x1ee   : > { %v2349_v55 = vadd.f32 %v2348_v52, %v2347_v0  ;;  %v1766_v45 = vadd.f32 %v2343_v35, %v1765_v43  ;;  %v2350_v30 = vpop.f32.mrb[22].mxu0  ;;  %v2446_v5 = vpop.f32.mrb[26].mxu1 }
 0x1ef   : > { %v2351_v6 = vpop.f32.mrb[23].mxu0  ;;  %v1768_v1 = vpop.f32.mrb[27].mxu1 }
 0x1f0   : > { %v1774_v58 = vadd.f32 %v2445_v37, %v2349_v55  ;;  %1868 = vst [vmem:[%s3214_s7 + $0x40] sm:$0xff] %v1766_v45  ;;  %v2352_v7 = vadd.f32 %v2351_v6, %v2350_v30  ;;  %v1769_v12 = vadd.f32 %v2346_v54, %v1768_v1 }
 0x1f2   : > { %1870 = vst [vmem:[%s3214_s7 + $0x50] sm:$0xff] %v1774_v58  ;;  %v1777_v59 = vadd.f32 %v2446_v5, %v2352_v7  ;;  %1869 = vst [vmem:[%s3214_s7 + $0x48] sm:$0xff] %v1769_v12 }
 0x1f4   : > { %1871 = vst [vmem:[%s3214_s7 + $0x58] sm:$0xff] %v1777_v59  ;;  %v2449_v13 = vpop.f32.mrb[28].mxu1 }
 0x1f5   : > { %v1781_v14 = vpop.f32.mrb[29].mxu1 }
 0x1f6   : > { %v2450_v57 = vpop.f32.mrb[30].mxu1 }
 0x1f7   : > { %v1784_v42 = vpop.f32.mrb[31].mxu1 }
 0x1f8   : > { %v2353_v39 = vpop.f32.mrb[24].mxu0 }
 0x1f9   : > { %v2354_v10 = vpop.f32.mrb[25].mxu0 }
 0x1fa   : > { %v2355_v15 = vadd.f32 %v2354_v10, %v2353_v39  ;;  %v2356_v16 = vpop.f32.mrb[26].mxu0 }
 0x1fb   : > { %v2357_v17 = vpop.f32.mrb[27].mxu0 }
 0x1fc   : > { %v2358_v24 = vadd.f32 %v2357_v17, %v2356_v16  ;;  %v1782_v34 = vadd.f32 %v2355_v15, %v1781_v14  ;;  %v2453_v25 = vpop.f32.mrb[32].mxu1 }
 0x1fd   : > { %v1797_v28 = vpop.f32.mrb[33].mxu1 }
 0x1fe   : > { %1872 = vst [vmem:[%s3214_s7 + $0x60] sm:$0xff] %v1782_v34  ;;  %v1785_v60 = vadd.f32 %v2358_v24, %v1784_v42  ;;  %v2454_v32 = vpop.f32.mrb[34].mxu1 }
 0x1ff   : > { %v1800_v31 = vpop.f32.mrb[35].mxu1 }
 0x200   : > { %1873 = vst [vmem:[%s3214_s7 + $0x68] sm:$0xff] %v1785_v60 }
 0x204   : > { %v2359_v8 = vpop.f32.mrb[28].mxu0  ;;  %v3230_v3 = vpop.f32.mrb[36].mxu1 }
 0x205   : > { %v2360_v36 = vpop.f32.mrb[29].mxu0  ;;  %v1813_v38 = vpop.f32.mrb[37].mxu1 }
 0x206   : > { %v2361_v40 = vadd.f32 %v2360_v36, %v2359_v8  ;;  %v2362_v44 = vpop.f32.mrb[30].mxu0  ;;  %v3232_v41 = vpop.f32.mrb[38].mxu1 }
 0x207   : > { %v2363_v50 = vpop.f32.mrb[31].mxu0  ;;  %v1816_v47 = vpop.f32.mrb[39].mxu1 }
 0x208   : > { %v1790_v48 = vadd.f32 %v2449_v13, %v2361_v40  ;;  %v2364_v46 = vadd.f32 %v2363_v50, %v2362_v44 }
 0x20a   : > { %1874 = vst [vmem:[%s3214_s7 + $0x70] sm:$0xff] %v1790_v48  ;;  %v1793_v49 = vadd.f32 %v2450_v57, %v2364_v46 }
 0x20c   : > { %1875 = vst [vmem:[%s3214_s7 + $0x78] sm:$0xff] %v1793_v49  ;;  %v2461_v9 = vpop.f32.mrb[40].mxu1 }
 0x20d   : > { %v1838_v51 = vadd.f32 %v2461_v9, %v3198_v62  ;;  %v1829_v35 = vpop.f32.mrb[41].mxu1 }
 0x20e   : > { %v1830_v56 = vadd.f32 %v3194_v2, %v1829_v35  ;;  %v2462_v53 = vpop.f32.mrb[42].mxu1 }
 0x20f   : > { %1886 = vst [vmem:[%s3214_s7 + $0xd0] sm:$0xff] %v1838_v51  ;;  %v1841_v54 = vadd.f32 %v2462_v53, %v3200_v4  ;;  %v1832_v21 = vpop.f32.mrb[43].mxu1 }
 0x210   : > { %1884 = vst [vmem:[%s3214_s7 + $0xc0] sm:$0xff] %v1830_v56  ;;  %v1833_v18 = vadd.f32 %v3196_v23, %v1832_v21  ;;  %v2365_v26 = vpop.f32.mrb[32].mxu0 }
 0x211   : > { %1887 = vst [vmem:[%s3214_s7 + $0xd8] sm:$0xff] %v1841_v54  ;;  %v2366_v61 = vpop.f32.mrb[33].mxu0 }
 0x212   : > { %1885 = vst [vmem:[%s3214_s7 + $0xc8] sm:$0xff] %v1833_v18  ;;  %v2367_v29 = vadd.f32 %v2366_v61, %v2365_v26  ;;  %v2368_v62 = vpop.f32.mrb[34].mxu0 }
 0x213   : > { %v2369_v20 = vpop.f32.mrb[35].mxu0 }
 0x214   : > { %v1798_v2 = vadd.f32 %v2367_v29, %v1797_v28  ;;  %v2370_v63 = vadd.f32 %v2369_v20, %v2368_v62  ;;  %v2465_v4 = vpop.f32.mrb[44].mxu1 }
 0x215   : > { %v1854_v27 = vadd.f32 %v2465_v4, %v3206_v33  ;;  %v1845_v0 = vpop.f32.mrb[45].mxu1 }
 0x216   : > { %1876 = vst [vmem:[%s3214_s7 + $0x80] sm:$0xff] %v1798_v2  ;;  %v1801_v23 = vadd.f32 %v2370_v63, %v1800_v31  ;;  %v1846_v37 = vadd.f32 %v3202_v19, %v1845_v0  ;;  %v2466_v52 = vpop.f32.mrb[46].mxu1 }
 0x217   : > { %1890 = vst [vmem:[%s3214_s7 + $0xf0] sm:$0xff] %v1854_v27  ;;  %v1857_v43 = vadd.f32 %v2466_v52, %v3208_v22  ;;  %v1848_v55 = vpop.f32.mrb[47].mxu1 }
 0x218   : > { %1877 = vst [vmem:[%s3214_s7 + $0x88] sm:$0xff] %v1801_v23  ;;  %1888 = vst [vmem:[%s3214_s7 + $0xe0] sm:$0xff] %v1846_v37  ;;  %v1849_v45 = vadd.f32 %v3204_v11, %v1848_v55 }
 0x219   : > { %1891 = vst [vmem:[%s3214_s7 + $0xf8] sm:$0xff] %v1857_v43 }
 0x21a   : > { %1889 = vst [vmem:[%s3214_s7 + $0xe8] sm:$0xff] %v1849_v45 }
 0x21c   : > { %v2371_v30 = vpop.f32.mrb[36].mxu0 }
 0x21d   : > { %v2372_v33 = vpop.f32.mrb[37].mxu0 }
 0x21e   : > { %v2373_v5 = vadd.f32 %v2372_v33, %v2371_v30  ;;  %v2374_v6 = vpop.f32.mrb[38].mxu0 }
 0x21f   : > { %v2375_v19 = vpop.f32.mrb[39].mxu0 }
 0x220   : > { %v1806_v1 = vadd.f32 %v2453_v25, %v2373_v5  ;;  %v2376_v58 = vadd.f32 %v2375_v19, %v2374_v6 }
 0x222   : > { %1878 = vst [vmem:[%s3214_s7 + $0x90] sm:$0xff] %v1806_v1  ;;  %v1809_v7 = vadd.f32 %v2454_v32, %v2376_v58 }
 0x224   : > { %1879 = vst [vmem:[%s3214_s7 + $0x98] sm:$0xff] %v1809_v7 }
 0x228   : > { %v2377_v22 = vpop.f32.mrb[40].mxu0 }
 0x229   : > { %v2378_v12 = vpop.f32.mrb[41].mxu0 }
 0x22a   : > { %v2379_v59 = vadd.f32 %v2378_v12, %v2377_v22  ;;  %v2380_v13 = vpop.f32.mrb[42].mxu0 }
 0x22b   : > { %v2381_v11 = vpop.f32.mrb[43].mxu0 }
 0x22c   : > { %v1814_v14 = vadd.f32 %v2379_v59, %v1813_v38  ;;  %v2382_v57 = vadd.f32 %v2381_v11, %v2380_v13 }
 0x22e   : > { %1880 = vst [vmem:[%s3214_s7 + $0xa0] sm:$0xff] %v1814_v14  ;;  %v1817_v42 = vadd.f32 %v2382_v57, %v1816_v47 }
 0x230   : > { %1881 = vst [vmem:[%s3214_s7 + $0xa8] sm:$0xff] %v1817_v42 }
 0x234   : > { %v2383_v39 = vpop.f32.mrb[44].mxu0 }
 0x235   : > { %v2384_v10 = vpop.f32.mrb[45].mxu0 }
 0x236   : > { %v2385_v15 = vadd.f32 %v2384_v10, %v2383_v39  ;;  %v2386_v16 = vpop.f32.mrb[46].mxu0 }
 0x237   : > { %v2387_v17 = vpop.f32.mrb[47].mxu0 }
 0x238   : > { %v1822_v24 = vadd.f32 %v3230_v3, %v2385_v15  ;;  %v2388_v34 = vadd.f32 %v2387_v17, %v2386_v16 }
 0x23a   : > { %1882 = vst [vmem:[%s3214_s7 + $0xb0] sm:$0xff] %v1822_v24  ;;  %v1825_v25 = vadd.f32 %v3232_v41, %v2388_v34 }
 0x23c   : > { %1883 = vst [vmem:[%s3214_s7 + $0xb8] sm:$0xff] %v1825_v25 }
 0x23d PF: > { %s12_s11 = sadd.s32 1, %s2551_s11   ;;  %s3274_s9 = smov %s2547_s10 }
 0x23e   : > { %p9_p5 = scmp.ge.s32.totalorder %s12_s11, 4   ;;  %s3275_s10 = smov %s3277_s12 }
 0x240   :  { %11 = sbr.rel (!%p9_p5) target bundleno = 2 (0x2), region = 66 }

</bundles_post_ra>
